<compile_context>
chip_gen: v5e
topology: v5e:2x2
jax: 0.10.0
libtpu: 0.0.40
codegen_flags: <defaults>
</compile_context>

<pallas_src>
import math
from functools import partial

import numpy as np
import jax
import jax.numpy as jnp
from jax.experimental import pallas as pl
from jax.experimental.pallas import tpu as pltpu


# ---------------------------------------------------------------------------
# Host-side glue: build the linear operators equivalent to resample()
# ---------------------------------------------------------------------------
def _sinc(x):
    return np.where(x != 0, np.sin(np.pi * x) / (np.pi * x), 1.0)


def _lanczos(x, a):
    cond = np.logical_and(-a < x, x < a)
    out = np.where(cond, _sinc(x) * _sinc(x / a), 0.0)
    return out / out.sum()


def _ramp(ratio, width):
    n = math.ceil(width / ratio + 1)
    out = np.empty([n], dtype=np.float64)
    cur = 0.0
    for i in range(n):
        out[i] = cur
        cur += ratio
    return np.concatenate([-out[1:][::-1], out])[1:-1]


def _reflect(j, h):
    if h == 1:
        return 0
    period = 2 * (h - 1)
    j = j % period
    return period - j if j >= h else j


def _lanczos_matrix(h, dh):
    """[h, h] reflect-padded lanczos anti-alias conv; identity when dh >= h."""
    if dh >= h:
        return np.eye(h)
    k = _lanczos(_ramp(dh / h, 2), 2)
    pad = (k.shape[0] - 1) // 2
    M = np.zeros((h, h))
    for i in range(h):
        for kk in range(k.shape[0]):
            M[i, _reflect(i + kk - pad, h)] += k[kk]
    return M


def _cubic_kernel(x, a=-0.75):
    x = abs(x)
    if x <= 1.0:
        return (a + 2) * x**3 - (a + 3) * x**2 + 1.0
    if x < 2.0:
        return a * x**3 - 5 * a * x**2 + 8 * a * x - 4 * a
    return 0.0


def _bicubic_matrix(h, dh):
    """[dh, h] PyTorch bicubic interpolation (align_corners=True, a=-0.75)."""
    M = np.zeros((dh, h))
    for i in range(dh):
        src = 0.0 if dh == 1 else i * (h - 1) / (dh - 1)
        x0 = math.floor(src)
        t = src - x0
        ws = [_cubic_kernel(t + 1), _cubic_kernel(t),
              _cubic_kernel(1 - t), _cubic_kernel(2 - t)]
        for m, w in zip((x0 - 1, x0, x0 + 1, x0 + 2), ws):
            M[i, min(max(m, 0), h - 1)] += w
    return M


def _resample_matrix(h, dh):
    """[dh, h] operator equal to resample() along one spatial axis."""
    return _bicubic_matrix(h, dh) @ _lanczos_matrix(h, dh)


def _build_cutout_operators(cut_size, cutn, side_y, side_x, rng):
    """Per-cutout (crop offset + resample) folded into dense operators."""
    max_size = min(side_x, side_y)
    ah = np.zeros((cutn, cut_size, side_y), dtype=np.float32)
    aw = np.zeros((cutn, cut_size, side_x), dtype=np.float32)
    for ch in range(cutn):
        if ch > cutn - cutn // 4:
            sz_y, sz_x, offy, offx = side_y, side_x, 0, 0
        else:
            frac = float(np.clip(rng.normal(0.8, 0.3),
                                 cut_size / max_size, 1.0))
            size = int(max_size * frac)
            sz_y = sz_x = size
            offx = int(rng.integers(0, abs(side_x - size + 1)))
            offy = int(rng.integers(0, abs(side_y - size + 1)))
        ah[ch, :, offy:offy + sz_y] = _resample_matrix(sz_y, cut_size)
        aw[ch, :, offx:offx + sz_x] = _resample_matrix(sz_x, cut_size)
    return ah, aw


def _cutout_operators(cut_size, cutn, h, w, seed):
    """Operators with the zero Pad(h//4) folded in (columns sliced to the
    unpadded image): Ah (cutn, P, H), Aw (cutn, P, W)."""
    pad = h // 4
    side_y, side_x = h + 2 * pad, w + 2 * pad
    rng = np.random.default_rng(seed)
    ah_full, aw_full = _build_cutout_operators(cut_size, cutn, side_y, side_x, rng)
    ah = np.ascontiguousarray(ah_full[:, :, pad:pad + h]).astype(np.float32)
    aw = np.ascontiguousarray(aw_full[:, :, pad:pad + w]).astype(np.float32)
    return ah, aw


def _choose_chunk(cutn, cut_size, nc, h, w, budget_bytes=24 << 20):
    """Largest cutout chunk Kc (divisor of cutn) fitting a per-step VMEM
    budget; prefers the smallest Kc whose MXU N-dim (Kc*cut_size) >= 256."""
    best = 1
    for d in range(1, cutn + 1):
        if cutn % d:
            continue
        m = d * cut_size
        step_bytes = 4 * (nc * h * w          # image block
                          + nc * h * m        # V scratch
                          + 2 * (m * h + w * m + nc * cut_size * m))
        if d > 1 and step_bytes > budget_bytes:
            break
        best = d
        if m >= 256:
            break
    return best


# ---------------------------------------------------------------------------
# Pallas kernel.  Per grid step (one chunk of Kc cutouts):
#   1) V = X_r @ AwT_chunk            -- single big MXU matmul,
#      X_r : (NC*H, W) rows (image, h),  AwT_chunk : (W, Kc*P) cols (cutout, q)
#   2) for each (cutout k, image b):  O[b,p, k,q] = Ah_k @ V[bH:(b+1)H, kP:(k+1)P]
#      assembled into a lane-dense (NC*P, Kc*P) output block.
# ---------------------------------------------------------------------------
def _cutout_kernel(x_ref, ah_ref, awt_ref, o_ref, v_ref, *, kc, nc, h, p):
    v_ref[...] = jnp.dot(x_ref[...], awt_ref[0],
                         preferred_element_type=jnp.float32)      # (NC*H, Kc*P)
    for k in range(kc):
        ah_k = ah_ref[0, k]                                       # (P, H)
        for b in range(nc):
            v_kb = v_ref[b * h:(b + 1) * h, k * p:(k + 1) * p]    # (H, P)
            o_ref[0, b * p:(b + 1) * p, k * p:(k + 1) * p] = jnp.dot(
                ah_k, v_kb, preferred_element_type=jnp.float32
            ).astype(o_ref.dtype)


def make_cutouts(x, cut_size, cutn, seed=0):
    """x: (N, C, H, W) float32.  Returns (cutn*N, C, cut_size, cut_size)."""
    n, c, h, w = x.shape
    p = cut_size
    nc = n * c

    ah_np, aw_np = _cutout_operators(p, cutn, h, w, seed)         # (cutn,P,H/W)

    kc = _choose_chunk(cutn, p, nc, h, w)
    n_chunks = cutn // kc

    # Operand layouts for the kernel (host-side numpy; no extra XLA work).
    ah_dev = jnp.asarray(ah_np.reshape(n_chunks, kc, p, h))        # (Ck,Kc,P,H)
    awt_dev = jnp.asarray(
        aw_np.reshape(n_chunks, kc, p, w)
             .transpose(0, 3, 1, 2)                                # (Ck,W,Kc,P)
             .reshape(n_chunks, w, kc * p))                        # (Ck,W,Kc*P)
    x_r = x.reshape(nc * h, w)                                     # rows (b, h)

    flops = 2 * cutn * nc * p * h * (w + p)
    bytes_accessed = 4 * (x_r.size + ah_dev.size + awt_dev.size
                          + n_chunks * nc * p * kc * p)
    step_bytes = 4 * (2 * (nc * h * w + kc * p * h + w * kc * p + nc * p * kc * p)
                      + nc * h * kc * p)
    vmem_limit = int(min(64 << 20, max(16 << 20, 2 * step_bytes)))

    out = pl.pallas_call(
        partial(_cutout_kernel, kc=kc, nc=nc, h=h, p=p),
        out_shape=jax.ShapeDtypeStruct((n_chunks, nc * p, kc * p), x.dtype),
        grid_spec=pltpu.PrefetchScalarGridSpec(
            num_scalar_prefetch=0,
            grid=(n_chunks,),
            in_specs=[
                pl.BlockSpec((nc * h, w), lambda i: (0, 0)),        # invariant
                pl.BlockSpec((1, kc, p, h), lambda i: (i, 0, 0, 0)),
                pl.BlockSpec((1, w, kc * p), lambda i: (i, 0, 0)),
            ],
            out_specs=pl.BlockSpec((1, nc * p, kc * p), lambda i: (i, 0, 0)),
            scratch_shapes=[pltpu.VMEM((nc * h, kc * p), jnp.float32)],
        ),
        compiler_params=pltpu.CompilerParams(
            dimension_semantics=("parallel",),
            vmem_limit_bytes=vmem_limit),
        cost_estimate=pl.CostEstimate(flops=flops, transcendentals=0,
                                      bytes_accessed=bytes_accessed),
    )(x_r, ah_dev, awt_dev)

    # (Ck, (n,c,p), (k_local,q)) -> (cutn*N, C, P, P)   [torch.cat along dim 0]
    out = out.reshape(n_chunks, n, c, p, kc, p)
    out = jnp.transpose(out, (0, 4, 1, 2, 3, 5)).reshape(cutn * n, c, p, p)
    return out


def make_cutouts_reference(x_np, cut_size, cutn, seed=0):
    """Pure-host numpy reference (same operators, float64 accumulation).
    Test-only; not part of the production path."""
    n, c, h, w = x_np.shape
    ah, aw = _cutout_operators(cut_size, cutn, h, w, seed)
    xf = np.asarray(x_np, dtype=np.float64).reshape(n * c, h, w)
    ref = np.einsum('kph,bhw,kqw->kbpq', ah.astype(np.float64), xf,
                    aw.astype(np.float64))
    return ref.reshape(cutn * n, c, cut_size, cut_size)


if __name__ == "__main__":
    cut_size, cutn = 8, 8
    key = jax.random.PRNGKey(0)
    x = jax.random.normal(key, (2, 4, 16, 16), dtype=jnp.float32)

    out = jax.block_until_ready(make_cutouts(x, cut_size, cutn, seed=0))
    assert out.shape == (cutn * x.shape[0], x.shape[1], cut_size, cut_size)

    ref = make_cutouts_reference(np.asarray(x), cut_size, cutn, seed=0)
    np.testing.assert_allclose(np.asarray(out), ref, rtol=1e-4, atol=5e-4)
    print("KERNEL_OK")
</pallas_src>

<mosaic_0001>
module attributes {stable_mosaic.version = 11 : i64} {
  func.func @_cutout_kernel(%arg0: i32, %arg1: memref<128x16xf32, #tpu.memory_space<vmem>>, %arg2: memref<1x8x8x16xf32, #tpu.memory_space<vmem>>, %arg3: memref<1x16x64xf32, #tpu.memory_space<vmem>>, %arg4: memref<1x64x64xf32, #tpu.memory_space<vmem>>, %arg5: memref<128x64xf32, #tpu.memory_space<vmem>>) attributes {dimension_semantics = [#tpu.dimension_semantics<parallel>], iteration_bounds = array<i64: 1>, scalar_prefetch = 0 : i64, scratch_operands = 1 : i64, tpu.core_type = #tpu.core_type<tc>, window_params = [{pipeline_mode = #tpu.pipeline_mode<synchronous>, transform_indices = @transform_0, window_bounds = array<i64: 128, 16>}, {transform_indices = @transform_1, window_bounds = array<i64: 1, 8, 8, 16>}, {transform_indices = @transform_2, window_bounds = array<i64: 1, 16, 64>}, {transform_indices = @transform_3, window_bounds = array<i64: 1, 64, 64>}]} {
    %c0 = arith.constant 0 : index
    %c0_0 = arith.constant 0 : index
    %0 = vector.load %arg1[%c0, %c0_0] : memref<128x16xf32, #tpu.memory_space<vmem>>, vector<128x16xf32>
    %c0_1 = arith.constant 0 : index
    %c0_2 = arith.constant 0 : index
    %c0_3 = arith.constant 0 : index
    %1 = vector.load %arg3[%c0_1, %c0_2, %c0_3] : memref<1x16x64xf32, #tpu.memory_space<vmem>>, vector<1x16x64xf32>
    %2 = vector.shape_cast %1 : vector<1x16x64xf32> to vector<16x64xf32>
    %cst = arith.constant dense<0.000000e+00> : vector<128x64xf32>
    %3 = tpu.matmul %0, %2, %cst {dimension_numbers = #tpu.dot_dimension_numbers<[1], [0], [0], [1], [0, 0, 1, 1], [], []>} : vector<128x16xf32>, vector<16x64xf32>, vector<128x64xf32> -> vector<128x64xf32>
    %c0_4 = arith.constant 0 : index
    %c0_5 = arith.constant 0 : index
    %4 = vector.load %arg5[%c0_4, %c0_5] : memref<128x64xf32, #tpu.memory_space<vmem>>, vector<128x64xf32>
    tpu.vector_store %arg5[%c0_4, %c0_5], %3 {strides = array<i32>} : memref<128x64xf32, #tpu.memory_space<vmem>>, vector<128x64xf32>,
    %c0_6 = arith.constant 0 : index
    %c0_7 = arith.constant 0 : index
    %c0_8 = arith.constant 0 : index
    %c0_9 = arith.constant 0 : index
    %5 = vector.load %arg2[%c0_6, %c0_7, %c0_8, %c0_9] : memref<1x8x8x16xf32, #tpu.memory_space<vmem>>, vector<1x1x8x16xf32>
    %6 = vector.shape_cast %5 : vector<1x1x8x16xf32> to vector<8x16xf32>
    %c0_10 = arith.constant 0 : index
    %c0_11 = arith.constant 0 : index
    %7 = vector.load %arg5[%c0_10, %c0_11] : memref<128x64xf32, #tpu.memory_space<vmem>>, vector<16x8xf32>
    %cst_12 = arith.constant dense<0.000000e+00> : vector<8x8xf32>
    %8 = tpu.matmul %6, %7, %cst_12 {dimension_numbers = #tpu.dot_dimension_numbers<[1], [0], [0], [1], [0, 0, 1, 1], [], []>} : vector<8x16xf32>, vector<16x8xf32>, vector<8x8xf32> -> vector<8x8xf32>
    %c0_13 = arith.constant 0 : index
    %c0_14 = arith.constant 0 : index
    %c0_15 = arith.constant 0 : index
    %9 = vector.load %arg4[%c0_13, %c0_14, %c0_15] : memref<1x64x64xf32, #tpu.memory_space<vmem>>, vector<1x8x8xf32>
    %10 = vector.shape_cast %9 : vector<1x8x8xf32> to vector<8x8xf32>
    %11 = vector.shape_cast %8 : vector<8x8xf32> to vector<1x8x8xf32>
    tpu.vector_store %arg4[%c0_13, %c0_14, %c0_15], %11 {strides = array<i32>} : memref<1x64x64xf32, #tpu.memory_space<vmem>>, vector<1x8x8xf32>,
    %c16 = arith.constant 16 : index
    %c0_16 = arith.constant 0 : index
    %12 = vector.load %arg5[%c16, %c0_16] : memref<128x64xf32, #tpu.memory_space<vmem>>, vector<16x8xf32>
    %cst_17 = arith.constant dense<0.000000e+00> : vector<8x8xf32>
    %13 = tpu.matmul %6, %12, %cst_17 {dimension_numbers = #tpu.dot_dimension_numbers<[1], [0], [0], [1], [0, 0, 1, 1], [], []>} : vector<8x16xf32>, vector<16x8xf32>, vector<8x8xf32> -> vector<8x8xf32>
    %c0_18 = arith.constant 0 : index
    %c8 = arith.constant 8 : index
    %c0_19 = arith.constant 0 : index
    %14 = vector.load %arg4[%c0_18, %c8, %c0_19] : memref<1x64x64xf32, #tpu.memory_space<vmem>>, vector<1x8x8xf32>
    %15 = vector.shape_cast %14 : vector<1x8x8xf32> to vector<8x8xf32>
    %16 = vector.shape_cast %13 : vector<8x8xf32> to vector<1x8x8xf32>
    tpu.vector_store %arg4[%c0_18, %c8, %c0_19], %16 {strides = array<i32>} : memref<1x64x64xf32, #tpu.memory_space<vmem>>, vector<1x8x8xf32>,
    %c32 = arith.constant 32 : index
    %c0_20 = arith.constant 0 : index
    %17 = vector.load %arg5[%c32, %c0_20] : memref<128x64xf32, #tpu.memory_space<vmem>>, vector<16x8xf32>
    %cst_21 = arith.constant dense<0.000000e+00> : vector<8x8xf32>
    %18 = tpu.matmul %6, %17, %cst_21 {dimension_numbers = #tpu.dot_dimension_numbers<[1], [0], [0], [1], [0, 0, 1, 1], [], []>} : vector<8x16xf32>, vector<16x8xf32>, vector<8x8xf32> -> vector<8x8xf32>
    %c0_22 = arith.constant 0 : index
    %c16_23 = arith.constant 16 : index
    %c0_24 = arith.constant 0 : index
    %19 = vector.load %arg4[%c0_22, %c16_23, %c0_24] : memref<1x64x64xf32, #tpu.memory_space<vmem>>, vector<1x8x8xf32>
    %20 = vector.shape_cast %19 : vector<1x8x8xf32> to vector<8x8xf32>
    %21 = vector.shape_cast %18 : vector<8x8xf32> to vector<1x8x8xf32>
    tpu.vector_store %arg4[%c0_22, %c16_23, %c0_24], %21 {strides = array<i32>} : memref<1x64x64xf32, #tpu.memory_space<vmem>>, vector<1x8x8xf32>,
    %c48 = arith.constant 48 : index
    %c0_25 = arith.constant 0 : index
    %22 = vector.load %arg5[%c48, %c0_25] : memref<128x64xf32, #tpu.memory_space<vmem>>, vector<16x8xf32>
    %cst_26 = arith.constant dense<0.000000e+00> : vector<8x8xf32>
    %23 = tpu.matmul %6, %22, %cst_26 {dimension_numbers = #tpu.dot_dimension_numbers<[1], [0], [0], [1], [0, 0, 1, 1], [], []>} : vector<8x16xf32>, vector<16x8xf32>, vector<8x8xf32> -> vector<8x8xf32>
    %c0_27 = arith.constant 0 : index
    %c24 = arith.constant 24 : index
    %c0_28 = arith.constant 0 : index
    %24 = vector.load %arg4[%c0_27, %c24, %c0_28] : memref<1x64x64xf32, #tpu.memory_space<vmem>>, vector<1x8x8xf32>
    %25 = vector.shape_cast %24 : vector<1x8x8xf32> to vector<8x8xf32>
    %26 = vector.shape_cast %23 : vector<8x8xf32> to vector<1x8x8xf32>
    tpu.vector_store %arg4[%c0_27, %c24, %c0_28], %26 {strides = array<i32>} : memref<1x64x64xf32, #tpu.memory_space<vmem>>, vector<1x8x8xf32>,
    %c64 = arith.constant 64 : index
    %c0_29 = arith.constant 0 : index
    %27 = vector.load %arg5[%c64, %c0_29] : memref<128x64xf32, #tpu.memory_space<vmem>>, vector<16x8xf32>
    %cst_30 = arith.constant dense<0.000000e+00> : vector<8x8xf32>
    %28 = tpu.matmul %6, %27, %cst_30 {dimension_numbers = #tpu.dot_dimension_numbers<[1], [0], [0], [1], [0, 0, 1, 1], [], []>} : vector<8x16xf32>, vector<16x8xf32>, vector<8x8xf32> -> vector<8x8xf32>
    %c0_31 = arith.constant 0 : index
    %c32_32 = arith.constant 32 : index
    %c0_33 = arith.constant 0 : index
    %29 = vector.load %arg4[%c0_31, %c32_32, %c0_33] : memref<1x64x64xf32, #tpu.memory_space<vmem>>, vector<1x8x8xf32>
    %30 = vector.shape_cast %29 : vector<1x8x8xf32> to vector<8x8xf32>
    %31 = vector.shape_cast %28 : vector<8x8xf32> to vector<1x8x8xf32>
    tpu.vector_store %arg4[%c0_31, %c32_32, %c0_33], %31 {strides = array<i32>} : memref<1x64x64xf32, #tpu.memory_space<vmem>>, vector<1x8x8xf32>,
    %c80 = arith.constant 80 : index
    %c0_34 = arith.constant 0 : index
    %32 = vector.load %arg5[%c80, %c0_34] : memref<128x64xf32, #tpu.memory_space<vmem>>, vector<16x8xf32>
    %cst_35 = arith.constant dense<0.000000e+00> : vector<8x8xf32>
    %33 = tpu.matmul %6, %32, %cst_35 {dimension_numbers = #tpu.dot_dimension_numbers<[1], [0], [0], [1], [0, 0, 1, 1], [], []>} : vector<8x16xf32>, vector<16x8xf32>, vector<8x8xf32> -> vector<8x8xf32>
    %c0_36 = arith.constant 0 : index
    %c40 = arith.constant 40 : index
    %c0_37 = arith.constant 0 : index
    %34 = vector.load %arg4[%c0_36, %c40, %c0_37] : memref<1x64x64xf32, #tpu.memory_space<vmem>>, vector<1x8x8xf32>
    %35 = vector.shape_cast %34 : vector<1x8x8xf32> to vector<8x8xf32>
    %36 = vector.shape_cast %33 : vector<8x8xf32> to vector<1x8x8xf32>
    tpu.vector_store %arg4[%c0_36, %c40, %c0_37], %36 {strides = array<i32>} : memref<1x64x64xf32, #tpu.memory_space<vmem>>, vector<1x8x8xf32>,
    %c96 = arith.constant 96 : index
    %c0_38 = arith.constant 0 : index
    %37 = vector.load %arg5[%c96, %c0_38] : memref<128x64xf32, #tpu.memory_space<vmem>>, vector<16x8xf32>
    %cst_39 = arith.constant dense<0.000000e+00> : vector<8x8xf32>
    %38 = tpu.matmul %6, %37, %cst_39 {dimension_numbers = #tpu.dot_dimension_numbers<[1], [0], [0], [1], [0, 0, 1, 1], [], []>} : vector<8x16xf32>, vector<16x8xf32>, vector<8x8xf32> -> vector<8x8xf32>
    %c0_40 = arith.constant 0 : index
    %c48_41 = arith.constant 48 : index
    %c0_42 = arith.constant 0 : index
    %39 = vector.load %arg4[%c0_40, %c48_41, %c0_42] : memref<1x64x64xf32, #tpu.memory_space<vmem>>, vector<1x8x8xf32>
    %40 = vector.shape_cast %39 : vector<1x8x8xf32> to vector<8x8xf32>
    %41 = vector.shape_cast %38 : vector<8x8xf32> to vector<1x8x8xf32>
    tpu.vector_store %arg4[%c0_40, %c48_41, %c0_42], %41 {strides = array<i32>} : memref<1x64x64xf32, #tpu.memory_space<vmem>>, vector<1x8x8xf32>,
    %c112 = arith.constant 112 : index
    %c0_43 = arith.constant 0 : index
    %42 = vector.load %arg5[%c112, %c0_43] : memref<128x64xf32, #tpu.memory_space<vmem>>, vector<16x8xf32>
    %cst_44 = arith.constant dense<0.000000e+00> : vector<8x8xf32>
    %43 = tpu.matmul %6, %42, %cst_44 {dimension_numbers = #tpu.dot_dimension_numbers<[1], [0], [0], [1], [0, 0, 1, 1], [], []>} : vector<8x16xf32>, vector<16x8xf32>, vector<8x8xf32> -> vector<8x8xf32>
    %c0_45 = arith.constant 0 : index
    %c56 = arith.constant 56 : index
    %c0_46 = arith.constant 0 : index
    %44 = vector.load %arg4[%c0_45, %c56, %c0_46] : memref<1x64x64xf32, #tpu.memory_space<vmem>>, vector<1x8x8xf32>
    %45 = vector.shape_cast %44 : vector<1x8x8xf32> to vector<8x8xf32>
    %46 = vector.shape_cast %43 : vector<8x8xf32> to vector<1x8x8xf32>
    tpu.vector_store %arg4[%c0_45, %c56, %c0_46], %46 {strides = array<i32>} : memref<1x64x64xf32, #tpu.memory_space<vmem>>, vector<1x8x8xf32>,
    %c0_47 = arith.constant 0 : index
    %c1 = arith.constant 1 : index
    %c0_48 = arith.constant 0 : index
    %c0_49 = arith.constant 0 : index
    %47 = vector.load %arg2[%c0_47, %c1, %c0_48, %c0_49] : memref<1x8x8x16xf32, #tpu.memory_space<vmem>>, vector<1x1x8x16xf32>
    %48 = vector.shape_cast %47 : vector<1x1x8x16xf32> to vector<8x16xf32>
    %c0_50 = arith.constant 0 : index
    %c8_51 = arith.constant 8 : index
    %49 = vector.load %arg5[%c0_50, %c8_51] : memref<128x64xf32, #tpu.memory_space<vmem>>, vector<16x8xf32>
    %cst_52 = arith.constant dense<0.000000e+00> : vector<8x8xf32>
    %50 = tpu.matmul %48, %49, %cst_52 {dimension_numbers = #tpu.dot_dimension_numbers<[1], [0], [0], [1], [0, 0, 1, 1], [], []>} : vector<8x16xf32>, vector<16x8xf32>, vector<8x8xf32> -> vector<8x8xf32>
    %c0_53 = arith.constant 0 : index
    %c0_54 = arith.constant 0 : index
    %c8_55 = arith.constant 8 : index
    %51 = vector.load %arg4[%c0_53, %c0_54, %c8_55] : memref<1x64x64xf32, #tpu.memory_space<vmem>>, vector<1x8x8xf32>
    %52 = vector.shape_cast %51 : vector<1x8x8xf32> to vector<8x8xf32>
    %53 = vector.shape_cast %50 : vector<8x8xf32> to vector<1x8x8xf32>
    tpu.vector_store %arg4[%c0_53, %c0_54, %c8_55], %53 {strides = array<i32>} : memref<1x64x64xf32, #tpu.memory_space<vmem>>, vector<1x8x8xf32>,
    %c16_56 = arith.constant 16 : index
    %c8_57 = arith.constant 8 : index
    %54 = vector.load %arg5[%c16_56, %c8_57] : memref<128x64xf32, #tpu.memory_space<vmem>>, vector<16x8xf32>
    %cst_58 = arith.constant dense<0.000000e+00> : vector<8x8xf32>
    %55 = tpu.matmul %48, %54, %cst_58 {dimension_numbers = #tpu.dot_dimension_numbers<[1], [0], [0], [1], [0, 0, 1, 1], [], []>} : vector<8x16xf32>, vector<16x8xf32>, vector<8x8xf32> -> vector<8x8xf32>
    %c0_59 = arith.constant 0 : index
    %c8_60 = arith.constant 8 : index
    %c8_61 = arith.constant 8 : index
    %56 = vector.load %arg4[%c0_59, %c8_60, %c8_61] : memref<1x64x64xf32, #tpu.memory_space<vmem>>, vector<1x8x8xf32>
    %57 = vector.shape_cast %56 : vector<1x8x8xf32> to vector<8x8xf32>
    %58 = vector.shape_cast %55 : vector<8x8xf32> to vector<1x8x8xf32>
    tpu.vector_store %arg4[%c0_59, %c8_60, %c8_61], %58 {strides = array<i32>} : memref<1x64x64xf32, #tpu.memory_space<vmem>>, vector<1x8x8xf32>,
    %c32_62 = arith.constant 32 : index
    %c8_63 = arith.constant 8 : index
    %59 = vector.load %arg5[%c32_62, %c8_63] : memref<128x64xf32, #tpu.memory_space<vmem>>, vector<16x8xf32>
    %cst_64 = arith.constant dense<0.000000e+00> : vector<8x8xf32>
    %60 = tpu.matmul %48, %59, %cst_64 {dimension_numbers = #tpu.dot_dimension_numbers<[1], [0], [0], [1], [0, 0, 1, 1], [], []>} : vector<8x16xf32>, vector<16x8xf32>, vector<8x8xf32> -> vector<8x8xf32>
    %c0_65 = arith.constant 0 : index
    %c16_66 = arith.constant 16 : index
    %c8_67 = arith.constant 8 : index
    %61 = vector.load %arg4[%c0_65, %c16_66, %c8_67] : memref<1x64x64xf32, #tpu.memory_space<vmem>>, vector<1x8x8xf32>
    %62 = vector.shape_cast %61 : vector<1x8x8xf32> to vector<8x8xf32>
    %63 = vector.shape_cast %60 : vector<8x8xf32> to vector<1x8x8xf32>
    tpu.vector_store %arg4[%c0_65, %c16_66, %c8_67], %63 {strides = array<i32>} : memref<1x64x64xf32, #tpu.memory_space<vmem>>, vector<1x8x8xf32>,
    %c48_68 = arith.constant 48 : index
    %c8_69 = arith.constant 8 : index
    %64 = vector.load %arg5[%c48_68, %c8_69] : memref<128x64xf32, #tpu.memory_space<vmem>>, vector<16x8xf32>
    %cst_70 = arith.constant dense<0.000000e+00> : vector<8x8xf32>
    %65 = tpu.matmul %48, %64, %cst_70 {dimension_numbers = #tpu.dot_dimension_numbers<[1], [0], [0], [1], [0, 0, 1, 1], [], []>} : vector<8x16xf32>, vector<16x8xf32>, vector<8x8xf32> -> vector<8x8xf32>
    %c0_71 = arith.constant 0 : index
    %c24_72 = arith.constant 24 : index
    %c8_73 = arith.constant 8 : index
    %66 = vector.load %arg4[%c0_71, %c24_72, %c8_73] : memref<1x64x64xf32, #tpu.memory_space<vmem>>, vector<1x8x8xf32>
    %67 = vector.shape_cast %66 : vector<1x8x8xf32> to vector<8x8xf32>
    %68 = vector.shape_cast %65 : vector<8x8xf32> to vector<1x8x8xf32>
    tpu.vector_store %arg4[%c0_71, %c24_72, %c8_73], %68 {strides = array<i32>} : memref<1x64x64xf32, #tpu.memory_space<vmem>>, vector<1x8x8xf32>,
    %c64_74 = arith.constant 64 : index
    %c8_75 = arith.constant 8 : index
    %69 = vector.load %arg5[%c64_74, %c8_75] : memref<128x64xf32, #tpu.memory_space<vmem>>, vector<16x8xf32>
    %cst_76 = arith.constant dense<0.000000e+00> : vector<8x8xf32>
    %70 = tpu.matmul %48, %69, %cst_76 {dimension_numbers = #tpu.dot_dimension_numbers<[1], [0], [0], [1], [0, 0, 1, 1], [], []>} : vector<8x16xf32>, vector<16x8xf32>, vector<8x8xf32> -> vector<8x8xf32>
    %c0_77 = arith.constant 0 : index
    %c32_78 = arith.constant 32 : index
    %c8_79 = arith.constant 8 : index
    %71 = vector.load %arg4[%c0_77, %c32_78, %c8_79] : memref<1x64x64xf32, #tpu.memory_space<vmem>>, vector<1x8x8xf32>
    %72 = vector.shape_cast %71 : vector<1x8x8xf32> to vector<8x8xf32>
    %73 = vector.shape_cast %70 : vector<8x8xf32> to vector<1x8x8xf32>
    tpu.vector_store %arg4[%c0_77, %c32_78, %c8_79], %73 {strides = array<i32>} : memref<1x64x64xf32, #tpu.memory_space<vmem>>, vector<1x8x8xf32>,
    %c80_80 = arith.constant 80 : index
    %c8_81 = arith.constant 8 : index
    %74 = vector.load %arg5[%c80_80, %c8_81] : memref<128x64xf32, #tpu.memory_space<vmem>>, vector<16x8xf32>
    %cst_82 = arith.constant dense<0.000000e+00> : vector<8x8xf32>
    %75 = tpu.matmul %48, %74, %cst_82 {dimension_numbers = #tpu.dot_dimension_numbers<[1], [0], [0], [1], [0, 0, 1, 1], [], []>} : vector<8x16xf32>, vector<16x8xf32>, vector<8x8xf32> -> vector<8x8xf32>
    %c0_83 = arith.constant 0 : index
    %c40_84 = arith.constant 40 : index
    %c8_85 = arith.constant 8 : index
    %76 = vector.load %arg4[%c0_83, %c40_84, %c8_85] : memref<1x64x64xf32, #tpu.memory_space<vmem>>, vector<1x8x8xf32>
    %77 = vector.shape_cast %76 : vector<1x8x8xf32> to vector<8x8xf32>
    %78 = vector.shape_cast %75 : vector<8x8xf32> to vector<1x8x8xf32>
    tpu.vector_store %arg4[%c0_83, %c40_84, %c8_85], %78 {strides = array<i32>} : memref<1x64x64xf32, #tpu.memory_space<vmem>>, vector<1x8x8xf32>,
    %c96_86 = arith.constant 96 : index
    %c8_87 = arith.constant 8 : index
    %79 = vector.load %arg5[%c96_86, %c8_87] : memref<128x64xf32, #tpu.memory_space<vmem>>, vector<16x8xf32>
    %cst_88 = arith.constant dense<0.000000e+00> : vector<8x8xf32>
    %80 = tpu.matmul %48, %79, %cst_88 {dimension_numbers = #tpu.dot_dimension_numbers<[1], [0], [0], [1], [0, 0, 1, 1], [], []>} : vector<8x16xf32>, vector<16x8xf32>, vector<8x8xf32> -> vector<8x8xf32>
    %c0_89 = arith.constant 0 : index
    %c48_90 = arith.constant 48 : index
    %c8_91 = arith.constant 8 : index
    %81 = vector.load %arg4[%c0_89, %c48_90, %c8_91] : memref<1x64x64xf32, #tpu.memory_space<vmem>>, vector<1x8x8xf32>
    %82 = vector.shape_cast %81 : vector<1x8x8xf32> to vector<8x8xf32>
    %83 = vector.shape_cast %80 : vector<8x8xf32> to vector<1x8x8xf32>
    tpu.vector_store %arg4[%c0_89, %c48_90, %c8_91], %83 {strides = array<i32>} : memref<1x64x64xf32, #tpu.memory_space<vmem>>, vector<1x8x8xf32>,
    %c112_92 = arith.constant 112 : index
    %c8_93 = arith.constant 8 : index
    %84 = vector.load %arg5[%c112_92, %c8_93] : memref<128x64xf32, #tpu.memory_space<vmem>>, vector<16x8xf32>
    %cst_94 = arith.constant dense<0.000000e+00> : vector<8x8xf32>
    %85 = tpu.matmul %48, %84, %cst_94 {dimension_numbers = #tpu.dot_dimension_numbers<[1], [0], [0], [1], [0, 0, 1, 1], [], []>} : vector<8x16xf32>, vector<16x8xf32>, vector<8x8xf32> -> vector<8x8xf32>
    %c0_95 = arith.constant 0 : index
    %c56_96 = arith.constant 56 : index
    %c8_97 = arith.constant 8 : index
    %86 = vector.load %arg4[%c0_95, %c56_96, %c8_97] : memref<1x64x64xf32, #tpu.memory_space<vmem>>, vector<1x8x8xf32>
    %87 = vector.shape_cast %86 : vector<1x8x8xf32> to vector<8x8xf32>
    %88 = vector.shape_cast %85 : vector<8x8xf32> to vector<1x8x8xf32>
    tpu.vector_store %arg4[%c0_95, %c56_96, %c8_97], %88 {strides = array<i32>} : memref<1x64x64xf32, #tpu.memory_space<vmem>>, vector<1x8x8xf32>,
    %c0_98 = arith.constant 0 : index
    %c2 = arith.constant 2 : index
    %c0_99 = arith.constant 0 : index
    %c0_100 = arith.constant 0 : index
    %89 = vector.load %arg2[%c0_98, %c2, %c0_99, %c0_100] : memref<1x8x8x16xf32, #tpu.memory_space<vmem>>, vector<1x1x8x16xf32>
    %90 = vector.shape_cast %89 : vector<1x1x8x16xf32> to vector<8x16xf32>
    %c0_101 = arith.constant 0 : index
    %c16_102 = arith.constant 16 : index
    %91 = vector.load %arg5[%c0_101, %c16_102] : memref<128x64xf32, #tpu.memory_space<vmem>>, vector<16x8xf32>
    %cst_103 = arith.constant dense<0.000000e+00> : vector<8x8xf32>
    %92 = tpu.matmul %90, %91, %cst_103 {dimension_numbers = #tpu.dot_dimension_numbers<[1], [0], [0], [1], [0, 0, 1, 1], [], []>} : vector<8x16xf32>, vector<16x8xf32>, vector<8x8xf32> -> vector<8x8xf32>
    %c0_104 = arith.constant 0 : index
    %c0_105 = arith.constant 0 : index
    %c16_106 = arith.constant 16 : index
    %93 = vector.load %arg4[%c0_104, %c0_105, %c16_106] : memref<1x64x64xf32, #tpu.memory_space<vmem>>, vector<1x8x8xf32>
    %94 = vector.shape_cast %93 : vector<1x8x8xf32> to vector<8x8xf32>
    %95 = vector.shape_cast %92 : vector<8x8xf32> to vector<1x8x8xf32>
    tpu.vector_store %arg4[%c0_104, %c0_105, %c16_106], %95 {strides = array<i32>} : memref<1x64x64xf32, #tpu.memory_space<vmem>>, vector<1x8x8xf32>,
    %c16_107 = arith.constant 16 : index
    %c16_108 = arith.constant 16 : index
    %96 = vector.load %arg5[%c16_107, %c16_108] : memref<128x64xf32, #tpu.memory_space<vmem>>, vector<16x8xf32>
    %cst_109 = arith.constant dense<0.000000e+00> : vector<8x8xf32>
    %97 = tpu.matmul %90, %96, %cst_109 {dimension_numbers = #tpu.dot_dimension_numbers<[1], [0], [0], [1], [0, 0, 1, 1], [], []>} : vector<8x16xf32>, vector<16x8xf32>, vector<8x8xf32> -> vector<8x8xf32>
    %c0_110 = arith.constant 0 : index
    %c8_111 = arith.constant 8 : index
    %c16_112 = arith.constant 16 : index
    %98 = vector.load %arg4[%c0_110, %c8_111, %c16_112] : memref<1x64x64xf32, #tpu.memory_space<vmem>>, vector<1x8x8xf32>
    %99 = vector.shape_cast %98 : vector<1x8x8xf32> to vector<8x8xf32>
    %100 = vector.shape_cast %97 : vector<8x8xf32> to vector<1x8x8xf32>
    tpu.vector_store %arg4[%c0_110, %c8_111, %c16_112], %100 {strides = array<i32>} : memref<1x64x64xf32, #tpu.memory_space<vmem>>, vector<1x8x8xf32>,
    %c32_113 = arith.constant 32 : index
    %c16_114 = arith.constant 16 : index
    %101 = vector.load %arg5[%c32_113, %c16_114] : memref<128x64xf32, #tpu.memory_space<vmem>>, vector<16x8xf32>
    %cst_115 = arith.constant dense<0.000000e+00> : vector<8x8xf32>
    %102 = tpu.matmul %90, %101, %cst_115 {dimension_numbers = #tpu.dot_dimension_numbers<[1], [0], [0], [1], [0, 0, 1, 1], [], []>} : vector<8x16xf32>, vector<16x8xf32>, vector<8x8xf32> -> vector<8x8xf32>
    %c0_116 = arith.constant 0 : index
    %c16_117 = arith.constant 16 : index
    %c16_118 = arith.constant 16 : index
    %103 = vector.load %arg4[%c0_116, %c16_117, %c16_118] : memref<1x64x64xf32, #tpu.memory_space<vmem>>, vector<1x8x8xf32>
    %104 = vector.shape_cast %103 : vector<1x8x8xf32> to vector<8x8xf32>
    %105 = vector.shape_cast %102 : vector<8x8xf32> to vector<1x8x8xf32>
    tpu.vector_store %arg4[%c0_116, %c16_117, %c16_118], %105 {strides = array<i32>} : memref<1x64x64xf32, #tpu.memory_space<vmem>>, vector<1x8x8xf32>,
    %c48_119 = arith.constant 48 : index
    %c16_120 = arith.constant 16 : index
    %106 = vector.load %arg5[%c48_119, %c16_120] : memref<128x64xf32, #tpu.memory_space<vmem>>, vector<16x8xf32>
    %cst_121 = arith.constant dense<0.000000e+00> : vector<8x8xf32>
    %107 = tpu.matmul %90, %106, %cst_121 {dimension_numbers = #tpu.dot_dimension_numbers<[1], [0], [0], [1], [0, 0, 1, 1], [], []>} : vector<8x16xf32>, vector<16x8xf32>, vector<8x8xf32> -> vector<8x8xf32>
    %c0_122 = arith.constant 0 : index
    %c24_123 = arith.constant 24 : index
    %c16_124 = arith.constant 16 : index
    %108 = vector.load %arg4[%c0_122, %c24_123, %c16_124] : memref<1x64x64xf32, #tpu.memory_space<vmem>>, vector<1x8x8xf32>
    %109 = vector.shape_cast %108 : vector<1x8x8xf32> to vector<8x8xf32>
    %110 = vector.shape_cast %107 : vector<8x8xf32> to vector<1x8x8xf32>
    tpu.vector_store %arg4[%c0_122, %c24_123, %c16_124], %110 {strides = array<i32>} : memref<1x64x64xf32, #tpu.memory_space<vmem>>, vector<1x8x8xf32>,
    %c64_125 = arith.constant 64 : index
    %c16_126 = arith.constant 16 : index
    %111 = vector.load %arg5[%c64_125, %c16_126] : memref<128x64xf32, #tpu.memory_space<vmem>>, vector<16x8xf32>
    %cst_127 = arith.constant dense<0.000000e+00> : vector<8x8xf32>
    %112 = tpu.matmul %90, %111, %cst_127 {dimension_numbers = #tpu.dot_dimension_numbers<[1], [0], [0], [1], [0, 0, 1, 1], [], []>} : vector<8x16xf32>, vector<16x8xf32>, vector<8x8xf32> -> vector<8x8xf32>
    %c0_128 = arith.constant 0 : index
    %c32_129 = arith.constant 32 : index
    %c16_130 = arith.constant 16 : index
    %113 = vector.load %arg4[%c0_128, %c32_129, %c16_130] : memref<1x64x64xf32, #tpu.memory_space<vmem>>, vector<1x8x8xf32>
    %114 = vector.shape_cast %113 : vector<1x8x8xf32> to vector<8x8xf32>
    %115 = vector.shape_cast %112 : vector<8x8xf32> to vector<1x8x8xf32>
    tpu.vector_store %arg4[%c0_128, %c32_129, %c16_130], %115 {strides = array<i32>} : memref<1x64x64xf32, #tpu.memory_space<vmem>>, vector<1x8x8xf32>,
    %c80_131 = arith.constant 80 : index
    %c16_132 = arith.constant 16 : index
    %116 = vector.load %arg5[%c80_131, %c16_132] : memref<128x64xf32, #tpu.memory_space<vmem>>, vector<16x8xf32>
    %cst_133 = arith.constant dense<0.000000e+00> : vector<8x8xf32>
    %117 = tpu.matmul %90, %116, %cst_133 {dimension_numbers = #tpu.dot_dimension_numbers<[1], [0], [0], [1], [0, 0, 1, 1], [], []>} : vector<8x16xf32>, vector<16x8xf32>, vector<8x8xf32> -> vector<8x8xf32>
    %c0_134 = arith.constant 0 : index
    %c40_135 = arith.constant 40 : index
    %c16_136 = arith.constant 16 : index
    %118 = vector.load %arg4[%c0_134, %c40_135, %c16_136] : memref<1x64x64xf32, #tpu.memory_space<vmem>>, vector<1x8x8xf32>
    %119 = vector.shape_cast %118 : vector<1x8x8xf32> to vector<8x8xf32>
    %120 = vector.shape_cast %117 : vector<8x8xf32> to vector<1x8x8xf32>
    tpu.vector_store %arg4[%c0_134, %c40_135, %c16_136], %120 {strides = array<i32>} : memref<1x64x64xf32, #tpu.memory_space<vmem>>, vector<1x8x8xf32>,
    %c96_137 = arith.constant 96 : index
    %c16_138 = arith.constant 16 : index
    %121 = vector.load %arg5[%c96_137, %c16_138] : memref<128x64xf32, #tpu.memory_space<vmem>>, vector<16x8xf32>
    %cst_139 = arith.constant dense<0.000000e+00> : vector<8x8xf32>
    %122 = tpu.matmul %90, %121, %cst_139 {dimension_numbers = #tpu.dot_dimension_numbers<[1], [0], [0], [1], [0, 0, 1, 1], [], []>} : vector<8x16xf32>, vector<16x8xf32>, vector<8x8xf32> -> vector<8x8xf32>
    %c0_140 = arith.constant 0 : index
    %c48_141 = arith.constant 48 : index
    %c16_142 = arith.constant 16 : index
    %123 = vector.load %arg4[%c0_140, %c48_141, %c16_142] : memref<1x64x64xf32, #tpu.memory_space<vmem>>, vector<1x8x8xf32>
    %124 = vector.shape_cast %123 : vector<1x8x8xf32> to vector<8x8xf32>
    %125 = vector.shape_cast %122 : vector<8x8xf32> to vector<1x8x8xf32>
    tpu.vector_store %arg4[%c0_140, %c48_141, %c16_142], %125 {strides = array<i32>} : memref<1x64x64xf32, #tpu.memory_space<vmem>>, vector<1x8x8xf32>,
    %c112_143 = arith.constant 112 : index
    %c16_144 = arith.constant 16 : index
    %126 = vector.load %arg5[%c112_143, %c16_144] : memref<128x64xf32, #tpu.memory_space<vmem>>, vector<16x8xf32>
    %cst_145 = arith.constant dense<0.000000e+00> : vector<8x8xf32>
    %127 = tpu.matmul %90, %126, %cst_145 {dimension_numbers = #tpu.dot_dimension_numbers<[1], [0], [0], [1], [0, 0, 1, 1], [], []>} : vector<8x16xf32>, vector<16x8xf32>, vector<8x8xf32> -> vector<8x8xf32>
    %c0_146 = arith.constant 0 : index
    %c56_147 = arith.constant 56 : index
    %c16_148 = arith.constant 16 : index
    %128 = vector.load %arg4[%c0_146, %c56_147, %c16_148] : memref<1x64x64xf32, #tpu.memory_space<vmem>>, vector<1x8x8xf32>
    %129 = vector.shape_cast %128 : vector<1x8x8xf32> to vector<8x8xf32>
    %130 = vector.shape_cast %127 : vector<8x8xf32> to vector<1x8x8xf32>
    tpu.vector_store %arg4[%c0_146, %c56_147, %c16_148], %130 {strides = array<i32>} : memref<1x64x64xf32, #tpu.memory_space<vmem>>, vector<1x8x8xf32>,
    %c0_149 = arith.constant 0 : index
    %c3 = arith.constant 3 : index
    %c0_150 = arith.constant 0 : index
    %c0_151 = arith.constant 0 : index
    %131 = vector.load %arg2[%c0_149, %c3, %c0_150, %c0_151] : memref<1x8x8x16xf32, #tpu.memory_space<vmem>>, vector<1x1x8x16xf32>
    %132 = vector.shape_cast %131 : vector<1x1x8x16xf32> to vector<8x16xf32>
    %c0_152 = arith.constant 0 : index
    %c24_153 = arith.constant 24 : index
    %133 = vector.load %arg5[%c0_152, %c24_153] : memref<128x64xf32, #tpu.memory_space<vmem>>, vector<16x8xf32>
    %cst_154 = arith.constant dense<0.000000e+00> : vector<8x8xf32>
    %134 = tpu.matmul %132, %133, %cst_154 {dimension_numbers = #tpu.dot_dimension_numbers<[1], [0], [0], [1], [0, 0, 1, 1], [], []>} : vector<8x16xf32>, vector<16x8xf32>, vector<8x8xf32> -> vector<8x8xf32>
    %c0_155 = arith.constant 0 : index
    %c0_156 = arith.constant 0 : index
    %c24_157 = arith.constant 24 : index
    %135 = vector.load %arg4[%c0_155, %c0_156, %c24_157] : memref<1x64x64xf32, #tpu.memory_space<vmem>>, vector<1x8x8xf32>
    %136 = vector.shape_cast %135 : vector<1x8x8xf32> to vector<8x8xf32>
    %137 = vector.shape_cast %134 : vector<8x8xf32> to vector<1x8x8xf32>
    tpu.vector_store %arg4[%c0_155, %c0_156, %c24_157], %137 {strides = array<i32>} : memref<1x64x64xf32, #tpu.memory_space<vmem>>, vector<1x8x8xf32>,
    %c16_158 = arith.constant 16 : index
    %c24_159 = arith.constant 24 : index
    %138 = vector.load %arg5[%c16_158, %c24_159] : memref<128x64xf32, #tpu.memory_space<vmem>>, vector<16x8xf32>
    %cst_160 = arith.constant dense<0.000000e+00> : vector<8x8xf32>
    %139 = tpu.matmul %132, %138, %cst_160 {dimension_numbers = #tpu.dot_dimension_numbers<[1], [0], [0], [1], [0, 0, 1, 1], [], []>} : vector<8x16xf32>, vector<16x8xf32>, vector<8x8xf32> -> vector<8x8xf32>
    %c0_161 = arith.constant 0 : index
    %c8_162 = arith.constant 8 : index
    %c24_163 = arith.constant 24 : index
    %140 = vector.load %arg4[%c0_161, %c8_162, %c24_163] : memref<1x64x64xf32, #tpu.memory_space<vmem>>, vector<1x8x8xf32>
    %141 = vector.shape_cast %140 : vector<1x8x8xf32> to vector<8x8xf32>
    %142 = vector.shape_cast %139 : vector<8x8xf32> to vector<1x8x8xf32>
    tpu.vector_store %arg4[%c0_161, %c8_162, %c24_163], %142 {strides = array<i32>} : memref<1x64x64xf32, #tpu.memory_space<vmem>>, vector<1x8x8xf32>,
    %c32_164 = arith.constant 32 : index
    %c24_165 = arith.constant 24 : index
    %143 = vector.load %arg5[%c32_164, %c24_165] : memref<128x64xf32, #tpu.memory_space<vmem>>, vector<16x8xf32>
    %cst_166 = arith.constant dense<0.000000e+00> : vector<8x8xf32>
    %144 = tpu.matmul %132, %143, %cst_166 {dimension_numbers = #tpu.dot_dimension_numbers<[1], [0], [0], [1], [0, 0, 1, 1], [], []>} : vector<8x16xf32>, vector<16x8xf32>, vector<8x8xf32> -> vector<8x8xf32>
    %c0_167 = arith.constant 0 : index
    %c16_168 = arith.constant 16 : index
    %c24_169 = arith.constant 24 : index
    %145 = vector.load %arg4[%c0_167, %c16_168, %c24_169] : memref<1x64x64xf32, #tpu.memory_space<vmem>>, vector<1x8x8xf32>
    %146 = vector.shape_cast %145 : vector<1x8x8xf32> to vector<8x8xf32>
    %147 = vector.shape_cast %144 : vector<8x8xf32> to vector<1x8x8xf32>
    tpu.vector_store %arg4[%c0_167, %c16_168, %c24_169], %147 {strides = array<i32>} : memref<1x64x64xf32, #tpu.memory_space<vmem>>, vector<1x8x8xf32>,
    %c48_170 = arith.constant 48 : index
    %c24_171 = arith.constant 24 : index
    %148 = vector.load %arg5[%c48_170, %c24_171] : memref<128x64xf32, #tpu.memory_space<vmem>>, vector<16x8xf32>
    %cst_172 = arith.constant dense<0.000000e+00> : vector<8x8xf32>
    %149 = tpu.matmul %132, %148, %cst_172 {dimension_numbers = #tpu.dot_dimension_numbers<[1], [0], [0], [1], [0, 0, 1, 1], [], []>} : vector<8x16xf32>, vector<16x8xf32>, vector<8x8xf32> -> vector<8x8xf32>
    %c0_173 = arith.constant 0 : index
    %c24_174 = arith.constant 24 : index
    %c24_175 = arith.constant 24 : index
    %150 = vector.load %arg4[%c0_173, %c24_174, %c24_175] : memref<1x64x64xf32, #tpu.memory_space<vmem>>, vector<1x8x8xf32>
    %151 = vector.shape_cast %150 : vector<1x8x8xf32> to vector<8x8xf32>
    %152 = vector.shape_cast %149 : vector<8x8xf32> to vector<1x8x8xf32>
    tpu.vector_store %arg4[%c0_173, %c24_174, %c24_175], %152 {strides = array<i32>} : memref<1x64x64xf32, #tpu.memory_space<vmem>>, vector<1x8x8xf32>,
    %c64_176 = arith.constant 64 : index
    %c24_177 = arith.constant 24 : index
    %153 = vector.load %arg5[%c64_176, %c24_177] : memref<128x64xf32, #tpu.memory_space<vmem>>, vector<16x8xf32>
    %cst_178 = arith.constant dense<0.000000e+00> : vector<8x8xf32>
    %154 = tpu.matmul %132, %153, %cst_178 {dimension_numbers = #tpu.dot_dimension_numbers<[1], [0], [0], [1], [0, 0, 1, 1], [], []>} : vector<8x16xf32>, vector<16x8xf32>, vector<8x8xf32> -> vector<8x8xf32>
    %c0_179 = arith.constant 0 : index
    %c32_180 = arith.constant 32 : index
    %c24_181 = arith.constant 24 : index
    %155 = vector.load %arg4[%c0_179, %c32_180, %c24_181] : memref<1x64x64xf32, #tpu.memory_space<vmem>>, vector<1x8x8xf32>
    %156 = vector.shape_cast %155 : vector<1x8x8xf32> to vector<8x8xf32>
    %157 = vector.shape_cast %154 : vector<8x8xf32> to vector<1x8x8xf32>
    tpu.vector_store %arg4[%c0_179, %c32_180, %c24_181], %157 {strides = array<i32>} : memref<1x64x64xf32, #tpu.memory_space<vmem>>, vector<1x8x8xf32>,
    %c80_182 = arith.constant 80 : index
    %c24_183 = arith.constant 24 : index
    %158 = vector.load %arg5[%c80_182, %c24_183] : memref<128x64xf32, #tpu.memory_space<vmem>>, vector<16x8xf32>
    %cst_184 = arith.constant dense<0.000000e+00> : vector<8x8xf32>
    %159 = tpu.matmul %132, %158, %cst_184 {dimension_numbers = #tpu.dot_dimension_numbers<[1], [0], [0], [1], [0, 0, 1, 1], [], []>} : vector<8x16xf32>, vector<16x8xf32>, vector<8x8xf32> -> vector<8x8xf32>
    %c0_185 = arith.constant 0 : index
    %c40_186 = arith.constant 40 : index
    %c24_187 = arith.constant 24 : index
    %160 = vector.load %arg4[%c0_185, %c40_186, %c24_187] : memref<1x64x64xf32, #tpu.memory_space<vmem>>, vector<1x8x8xf32>
    %161 = vector.shape_cast %160 : vector<1x8x8xf32> to vector<8x8xf32>
    %162 = vector.shape_cast %159 : vector<8x8xf32> to vector<1x8x8xf32>
    tpu.vector_store %arg4[%c0_185, %c40_186, %c24_187], %162 {strides = array<i32>} : memref<1x64x64xf32, #tpu.memory_space<vmem>>, vector<1x8x8xf32>,
    %c96_188 = arith.constant 96 : index
    %c24_189 = arith.constant 24 : index
    %163 = vector.load %arg5[%c96_188, %c24_189] : memref<128x64xf32, #tpu.memory_space<vmem>>, vector<16x8xf32>
    %cst_190 = arith.constant dense<0.000000e+00> : vector<8x8xf32>
    %164 = tpu.matmul %132, %163, %cst_190 {dimension_numbers = #tpu.dot_dimension_numbers<[1], [0], [0], [1], [0, 0, 1, 1], [], []>} : vector<8x16xf32>, vector<16x8xf32>, vector<8x8xf32> -> vector<8x8xf32>
    %c0_191 = arith.constant 0 : index
    %c48_192 = arith.constant 48 : index
    %c24_193 = arith.constant 24 : index
    %165 = vector.load %arg4[%c0_191, %c48_192, %c24_193] : memref<1x64x64xf32, #tpu.memory_space<vmem>>, vector<1x8x8xf32>
    %166 = vector.shape_cast %165 : vector<1x8x8xf32> to vector<8x8xf32>
    %167 = vector.shape_cast %164 : vector<8x8xf32> to vector<1x8x8xf32>
    tpu.vector_store %arg4[%c0_191, %c48_192, %c24_193], %167 {strides = array<i32>} : memref<1x64x64xf32, #tpu.memory_space<vmem>>, vector<1x8x8xf32>,
    %c112_194 = arith.constant 112 : index
    %c24_195 = arith.constant 24 : index
    %168 = vector.load %arg5[%c112_194, %c24_195] : memref<128x64xf32, #tpu.memory_space<vmem>>, vector<16x8xf32>
    %cst_196 = arith.constant dense<0.000000e+00> : vector<8x8xf32>
    %169 = tpu.matmul %132, %168, %cst_196 {dimension_numbers = #tpu.dot_dimension_numbers<[1], [0], [0], [1], [0, 0, 1, 1], [], []>} : vector<8x16xf32>, vector<16x8xf32>, vector<8x8xf32> -> vector<8x8xf32>
    %c0_197 = arith.constant 0 : index
    %c56_198 = arith.constant 56 : index
    %c24_199 = arith.constant 24 : index
    %170 = vector.load %arg4[%c0_197, %c56_198, %c24_199] : memref<1x64x64xf32, #tpu.memory_space<vmem>>, vector<1x8x8xf32>
    %171 = vector.shape_cast %170 : vector<1x8x8xf32> to vector<8x8xf32>
    %172 = vector.shape_cast %169 : vector<8x8xf32> to vector<1x8x8xf32>
    tpu.vector_store %arg4[%c0_197, %c56_198, %c24_199], %172 {strides = array<i32>} : memref<1x64x64xf32, #tpu.memory_space<vmem>>, vector<1x8x8xf32>,
    %c0_200 = arith.constant 0 : index
    %c4 = arith.constant 4 : index
    %c0_201 = arith.constant 0 : index
    %c0_202 = arith.constant 0 : index
    %173 = vector.load %arg2[%c0_200, %c4, %c0_201, %c0_202] : memref<1x8x8x16xf32, #tpu.memory_space<vmem>>, vector<1x1x8x16xf32>
    %174 = vector.shape_cast %173 : vector<1x1x8x16xf32> to vector<8x16xf32>
    %c0_203 = arith.constant 0 : index
    %c32_204 = arith.constant 32 : index
    %175 = vector.load %arg5[%c0_203, %c32_204] : memref<128x64xf32, #tpu.memory_space<vmem>>, vector<16x8xf32>
    %cst_205 = arith.constant dense<0.000000e+00> : vector<8x8xf32>
    %176 = tpu.matmul %174, %175, %cst_205 {dimension_numbers = #tpu.dot_dimension_numbers<[1], [0], [0], [1], [0, 0, 1, 1], [], []>} : vector<8x16xf32>, vector<16x8xf32>, vector<8x8xf32> -> vector<8x8xf32>
    %c0_206 = arith.constant 0 : index
    %c0_207 = arith.constant 0 : index
    %c32_208 = arith.constant 32 : index
    %177 = vector.load %arg4[%c0_206, %c0_207, %c32_208] : memref<1x64x64xf32, #tpu.memory_space<vmem>>, vector<1x8x8xf32>
    %178 = vector.shape_cast %177 : vector<1x8x8xf32> to vector<8x8xf32>
    %179 = vector.shape_cast %176 : vector<8x8xf32> to vector<1x8x8xf32>
    tpu.vector_store %arg4[%c0_206, %c0_207, %c32_208], %179 {strides = array<i32>} : memref<1x64x64xf32, #tpu.memory_space<vmem>>, vector<1x8x8xf32>,
    %c16_209 = arith.constant 16 : index
    %c32_210 = arith.constant 32 : index
    %180 = vector.load %arg5[%c16_209, %c32_210] : memref<128x64xf32, #tpu.memory_space<vmem>>, vector<16x8xf32>
    %cst_211 = arith.constant dense<0.000000e+00> : vector<8x8xf32>
    %181 = tpu.matmul %174, %180, %cst_211 {dimension_numbers = #tpu.dot_dimension_numbers<[1], [0], [0], [1], [0, 0, 1, 1], [], []>} : vector<8x16xf32>, vector<16x8xf32>, vector<8x8xf32> -> vector<8x8xf32>
    %c0_212 = arith.constant 0 : index
    %c8_213 = arith.constant 8 : index
    %c32_214 = arith.constant 32 : index
    %182 = vector.load %arg4[%c0_212, %c8_213, %c32_214] : memref<1x64x64xf32, #tpu.memory_space<vmem>>, vector<1x8x8xf32>
    %183 = vector.shape_cast %182 : vector<1x8x8xf32> to vector<8x8xf32>
    %184 = vector.shape_cast %181 : vector<8x8xf32> to vector<1x8x8xf32>
    tpu.vector_store %arg4[%c0_212, %c8_213, %c32_214], %184 {strides = array<i32>} : memref<1x64x64xf32, #tpu.memory_space<vmem>>, vector<1x8x8xf32>,
    %c32_215 = arith.constant 32 : index
    %c32_216 = arith.constant 32 : index
    %185 = vector.load %arg5[%c32_215, %c32_216] : memref<128x64xf32, #tpu.memory_space<vmem>>, vector<16x8xf32>
    %cst_217 = arith.constant dense<0.000000e+00> : vector<8x8xf32>
    %186 = tpu.matmul %174, %185, %cst_217 {dimension_numbers = #tpu.dot_dimension_numbers<[1], [0], [0], [1], [0, 0, 1, 1], [], []>} : vector<8x16xf32>, vector<16x8xf32>, vector<8x8xf32> -> vector<8x8xf32>
    %c0_218 = arith.constant 0 : index
    %c16_219 = arith.constant 16 : index
    %c32_220 = arith.constant 32 : index
    %187 = vector.load %arg4[%c0_218, %c16_219, %c32_220] : memref<1x64x64xf32, #tpu.memory_space<vmem>>, vector<1x8x8xf32>
    %188 = vector.shape_cast %187 : vector<1x8x8xf32> to vector<8x8xf32>
    %189 = vector.shape_cast %186 : vector<8x8xf32> to vector<1x8x8xf32>
    tpu.vector_store %arg4[%c0_218, %c16_219, %c32_220], %189 {strides = array<i32>} : memref<1x64x64xf32, #tpu.memory_space<vmem>>, vector<1x8x8xf32>,
    %c48_221 = arith.constant 48 : index
    %c32_222 = arith.constant 32 : index
    %190 = vector.load %arg5[%c48_221, %c32_222] : memref<128x64xf32, #tpu.memory_space<vmem>>, vector<16x8xf32>
    %cst_223 = arith.constant dense<0.000000e+00> : vector<8x8xf32>
    %191 = tpu.matmul %174, %190, %cst_223 {dimension_numbers = #tpu.dot_dimension_numbers<[1], [0], [0], [1], [0, 0, 1, 1], [], []>} : vector<8x16xf32>, vector<16x8xf32>, vector<8x8xf32> -> vector<8x8xf32>
    %c0_224 = arith.constant 0 : index
    %c24_225 = arith.constant 24 : index
    %c32_226 = arith.constant 32 : index
    %192 = vector.load %arg4[%c0_224, %c24_225, %c32_226] : memref<1x64x64xf32, #tpu.memory_space<vmem>>, vector<1x8x8xf32>
    %193 = vector.shape_cast %192 : vector<1x8x8xf32> to vector<8x8xf32>
    %194 = vector.shape_cast %191 : vector<8x8xf32> to vector<1x8x8xf32>
    tpu.vector_store %arg4[%c0_224, %c24_225, %c32_226], %194 {strides = array<i32>} : memref<1x64x64xf32, #tpu.memory_space<vmem>>, vector<1x8x8xf32>,
    %c64_227 = arith.constant 64 : index
    %c32_228 = arith.constant 32 : index
    %195 = vector.load %arg5[%c64_227, %c32_228] : memref<128x64xf32, #tpu.memory_space<vmem>>, vector<16x8xf32>
    %cst_229 = arith.constant dense<0.000000e+00> : vector<8x8xf32>
    %196 = tpu.matmul %174, %195, %cst_229 {dimension_numbers = #tpu.dot_dimension_numbers<[1], [0], [0], [1], [0, 0, 1, 1], [], []>} : vector<8x16xf32>, vector<16x8xf32>, vector<8x8xf32> -> vector<8x8xf32>
    %c0_230 = arith.constant 0 : index
    %c32_231 = arith.constant 32 : index
    %c32_232 = arith.constant 32 : index
    %197 = vector.load %arg4[%c0_230, %c32_231, %c32_232] : memref<1x64x64xf32, #tpu.memory_space<vmem>>, vector<1x8x8xf32>
    %198 = vector.shape_cast %197 : vector<1x8x8xf32> to vector<8x8xf32>
    %199 = vector.shape_cast %196 : vector<8x8xf32> to vector<1x8x8xf32>
    tpu.vector_store %arg4[%c0_230, %c32_231, %c32_232], %199 {strides = array<i32>} : memref<1x64x64xf32, #tpu.memory_space<vmem>>, vector<1x8x8xf32>,
    %c80_233 = arith.constant 80 : index
    %c32_234 = arith.constant 32 : index
    %200 = vector.load %arg5[%c80_233, %c32_234] : memref<128x64xf32, #tpu.memory_space<vmem>>, vector<16x8xf32>
    %cst_235 = arith.constant dense<0.000000e+00> : vector<8x8xf32>
    %201 = tpu.matmul %174, %200, %cst_235 {dimension_numbers = #tpu.dot_dimension_numbers<[1], [0], [0], [1], [0, 0, 1, 1], [], []>} : vector<8x16xf32>, vector<16x8xf32>, vector<8x8xf32> -> vector<8x8xf32>
    %c0_236 = arith.constant 0 : index
    %c40_237 = arith.constant 40 : index
    %c32_238 = arith.constant 32 : index
    %202 = vector.load %arg4[%c0_236, %c40_237, %c32_238] : memref<1x64x64xf32, #tpu.memory_space<vmem>>, vector<1x8x8xf32>
    %203 = vector.shape_cast %202 : vector<1x8x8xf32> to vector<8x8xf32>
    %204 = vector.shape_cast %201 : vector<8x8xf32> to vector<1x8x8xf32>
    tpu.vector_store %arg4[%c0_236, %c40_237, %c32_238], %204 {strides = array<i32>} : memref<1x64x64xf32, #tpu.memory_space<vmem>>, vector<1x8x8xf32>,
    %c96_239 = arith.constant 96 : index
    %c32_240 = arith.constant 32 : index
    %205 = vector.load %arg5[%c96_239, %c32_240] : memref<128x64xf32, #tpu.memory_space<vmem>>, vector<16x8xf32>
    %cst_241 = arith.constant dense<0.000000e+00> : vector<8x8xf32>
    %206 = tpu.matmul %174, %205, %cst_241 {dimension_numbers = #tpu.dot_dimension_numbers<[1], [0], [0], [1], [0, 0, 1, 1], [], []>} : vector<8x16xf32>, vector<16x8xf32>, vector<8x8xf32> -> vector<8x8xf32>
    %c0_242 = arith.constant 0 : index
    %c48_243 = arith.constant 48 : index
    %c32_244 = arith.constant 32 : index
    %207 = vector.load %arg4[%c0_242, %c48_243, %c32_244] : memref<1x64x64xf32, #tpu.memory_space<vmem>>, vector<1x8x8xf32>
    %208 = vector.shape_cast %207 : vector<1x8x8xf32> to vector<8x8xf32>
    %209 = vector.shape_cast %206 : vector<8x8xf32> to vector<1x8x8xf32>
    tpu.vector_store %arg4[%c0_242, %c48_243, %c32_244], %209 {strides = array<i32>} : memref<1x64x64xf32, #tpu.memory_space<vmem>>, vector<1x8x8xf32>,
    %c112_245 = arith.constant 112 : index
    %c32_246 = arith.constant 32 : index
    %210 = vector.load %arg5[%c112_245, %c32_246] : memref<128x64xf32, #tpu.memory_space<vmem>>, vector<16x8xf32>
    %cst_247 = arith.constant dense<0.000000e+00> : vector<8x8xf32>
    %211 = tpu.matmul %174, %210, %cst_247 {dimension_numbers = #tpu.dot_dimension_numbers<[1], [0], [0], [1], [0, 0, 1, 1], [], []>} : vector<8x16xf32>, vector<16x8xf32>, vector<8x8xf32> -> vector<8x8xf32>
    %c0_248 = arith.constant 0 : index
    %c56_249 = arith.constant 56 : index
    %c32_250 = arith.constant 32 : index
    %212 = vector.load %arg4[%c0_248, %c56_249, %c32_250] : memref<1x64x64xf32, #tpu.memory_space<vmem>>, vector<1x8x8xf32>
    %213 = vector.shape_cast %212 : vector<1x8x8xf32> to vector<8x8xf32>
    %214 = vector.shape_cast %211 : vector<8x8xf32> to vector<1x8x8xf32>
    tpu.vector_store %arg4[%c0_248, %c56_249, %c32_250], %214 {strides = array<i32>} : memref<1x64x64xf32, #tpu.memory_space<vmem>>, vector<1x8x8xf32>,
    %c0_251 = arith.constant 0 : index
    %c5 = arith.constant 5 : index
    %c0_252 = arith.constant 0 : index
    %c0_253 = arith.constant 0 : index
    %215 = vector.load %arg2[%c0_251, %c5, %c0_252, %c0_253] : memref<1x8x8x16xf32, #tpu.memory_space<vmem>>, vector<1x1x8x16xf32>
    %216 = vector.shape_cast %215 : vector<1x1x8x16xf32> to vector<8x16xf32>
    %c0_254 = arith.constant 0 : index
    %c40_255 = arith.constant 40 : index
    %217 = vector.load %arg5[%c0_254, %c40_255] : memref<128x64xf32, #tpu.memory_space<vmem>>, vector<16x8xf32>
    %cst_256 = arith.constant dense<0.000000e+00> : vector<8x8xf32>
    %218 = tpu.matmul %216, %217, %cst_256 {dimension_numbers = #tpu.dot_dimension_numbers<[1], [0], [0], [1], [0, 0, 1, 1], [], []>} : vector<8x16xf32>, vector<16x8xf32>, vector<8x8xf32> -> vector<8x8xf32>
    %c0_257 = arith.constant 0 : index
    %c0_258 = arith.constant 0 : index
    %c40_259 = arith.constant 40 : index
    %219 = vector.load %arg4[%c0_257, %c0_258, %c40_259] : memref<1x64x64xf32, #tpu.memory_space<vmem>>, vector<1x8x8xf32>
    %220 = vector.shape_cast %219 : vector<1x8x8xf32> to vector<8x8xf32>
    %221 = vector.shape_cast %218 : vector<8x8xf32> to vector<1x8x8xf32>
    tpu.vector_store %arg4[%c0_257, %c0_258, %c40_259], %221 {strides = array<i32>} : memref<1x64x64xf32, #tpu.memory_space<vmem>>, vector<1x8x8xf32>,
    %c16_260 = arith.constant 16 : index
    %c40_261 = arith.constant 40 : index
    %222 = vector.load %arg5[%c16_260, %c40_261] : memref<128x64xf32, #tpu.memory_space<vmem>>, vector<16x8xf32>
    %cst_262 = arith.constant dense<0.000000e+00> : vector<8x8xf32>
    %223 = tpu.matmul %216, %222, %cst_262 {dimension_numbers = #tpu.dot_dimension_numbers<[1], [0], [0], [1], [0, 0, 1, 1], [], []>} : vector<8x16xf32>, vector<16x8xf32>, vector<8x8xf32> -> vector<8x8xf32>
    %c0_263 = arith.constant 0 : index
    %c8_264 = arith.constant 8 : index
    %c40_265 = arith.constant 40 : index
    %224 = vector.load %arg4[%c0_263, %c8_264, %c40_265] : memref<1x64x64xf32, #tpu.memory_space<vmem>>, vector<1x8x8xf32>
    %225 = vector.shape_cast %224 : vector<1x8x8xf32> to vector<8x8xf32>
    %226 = vector.shape_cast %223 : vector<8x8xf32> to vector<1x8x8xf32>
    tpu.vector_store %arg4[%c0_263, %c8_264, %c40_265], %226 {strides = array<i32>} : memref<1x64x64xf32, #tpu.memory_space<vmem>>, vector<1x8x8xf32>,
    %c32_266 = arith.constant 32 : index
    %c40_267 = arith.constant 40 : index
    %227 = vector.load %arg5[%c32_266, %c40_267] : memref<128x64xf32, #tpu.memory_space<vmem>>, vector<16x8xf32>
    %cst_268 = arith.constant dense<0.000000e+00> : vector<8x8xf32>
    %228 = tpu.matmul %216, %227, %cst_268 {dimension_numbers = #tpu.dot_dimension_numbers<[1], [0], [0], [1], [0, 0, 1, 1], [], []>} : vector<8x16xf32>, vector<16x8xf32>, vector<8x8xf32> -> vector<8x8xf32>
    %c0_269 = arith.constant 0 : index
    %c16_270 = arith.constant 16 : index
    %c40_271 = arith.constant 40 : index
    %229 = vector.load %arg4[%c0_269, %c16_270, %c40_271] : memref<1x64x64xf32, #tpu.memory_space<vmem>>, vector<1x8x8xf32>
    %230 = vector.shape_cast %229 : vector<1x8x8xf32> to vector<8x8xf32>
    %231 = vector.shape_cast %228 : vector<8x8xf32> to vector<1x8x8xf32>
    tpu.vector_store %arg4[%c0_269, %c16_270, %c40_271], %231 {strides = array<i32>} : memref<1x64x64xf32, #tpu.memory_space<vmem>>, vector<1x8x8xf32>,
    %c48_272 = arith.constant 48 : index
    %c40_273 = arith.constant 40 : index
    %232 = vector.load %arg5[%c48_272, %c40_273] : memref<128x64xf32, #tpu.memory_space<vmem>>, vector<16x8xf32>
    %cst_274 = arith.constant dense<0.000000e+00> : vector<8x8xf32>
    %233 = tpu.matmul %216, %232, %cst_274 {dimension_numbers = #tpu.dot_dimension_numbers<[1], [0], [0], [1], [0, 0, 1, 1], [], []>} : vector<8x16xf32>, vector<16x8xf32>, vector<8x8xf32> -> vector<8x8xf32>
    %c0_275 = arith.constant 0 : index
    %c24_276 = arith.constant 24 : index
    %c40_277 = arith.constant 40 : index
    %234 = vector.load %arg4[%c0_275, %c24_276, %c40_277] : memref<1x64x64xf32, #tpu.memory_space<vmem>>, vector<1x8x8xf32>
    %235 = vector.shape_cast %234 : vector<1x8x8xf32> to vector<8x8xf32>
    %236 = vector.shape_cast %233 : vector<8x8xf32> to vector<1x8x8xf32>
    tpu.vector_store %arg4[%c0_275, %c24_276, %c40_277], %236 {strides = array<i32>} : memref<1x64x64xf32, #tpu.memory_space<vmem>>, vector<1x8x8xf32>,
    %c64_278 = arith.constant 64 : index
    %c40_279 = arith.constant 40 : index
    %237 = vector.load %arg5[%c64_278, %c40_279] : memref<128x64xf32, #tpu.memory_space<vmem>>, vector<16x8xf32>
    %cst_280 = arith.constant dense<0.000000e+00> : vector<8x8xf32>
    %238 = tpu.matmul %216, %237, %cst_280 {dimension_numbers = #tpu.dot_dimension_numbers<[1], [0], [0], [1], [0, 0, 1, 1], [], []>} : vector<8x16xf32>, vector<16x8xf32>, vector<8x8xf32> -> vector<8x8xf32>
    %c0_281 = arith.constant 0 : index
    %c32_282 = arith.constant 32 : index
    %c40_283 = arith.constant 40 : index
    %239 = vector.load %arg4[%c0_281, %c32_282, %c40_283] : memref<1x64x64xf32, #tpu.memory_space<vmem>>, vector<1x8x8xf32>
    %240 = vector.shape_cast %239 : vector<1x8x8xf32> to vector<8x8xf32>
    %241 = vector.shape_cast %238 : vector<8x8xf32> to vector<1x8x8xf32>
    tpu.vector_store %arg4[%c0_281, %c32_282, %c40_283], %241 {strides = array<i32>} : memref<1x64x64xf32, #tpu.memory_space<vmem>>, vector<1x8x8xf32>,
    %c80_284 = arith.constant 80 : index
    %c40_285 = arith.constant 40 : index
    %242 = vector.load %arg5[%c80_284, %c40_285] : memref<128x64xf32, #tpu.memory_space<vmem>>, vector<16x8xf32>
    %cst_286 = arith.constant dense<0.000000e+00> : vector<8x8xf32>
    %243 = tpu.matmul %216, %242, %cst_286 {dimension_numbers = #tpu.dot_dimension_numbers<[1], [0], [0], [1], [0, 0, 1, 1], [], []>} : vector<8x16xf32>, vector<16x8xf32>, vector<8x8xf32> -> vector<8x8xf32>
    %c0_287 = arith.constant 0 : index
    %c40_288 = arith.constant 40 : index
    %c40_289 = arith.constant 40 : index
    %244 = vector.load %arg4[%c0_287, %c40_288, %c40_289] : memref<1x64x64xf32, #tpu.memory_space<vmem>>, vector<1x8x8xf32>
    %245 = vector.shape_cast %244 : vector<1x8x8xf32> to vector<8x8xf32>
    %246 = vector.shape_cast %243 : vector<8x8xf32> to vector<1x8x8xf32>
    tpu.vector_store %arg4[%c0_287, %c40_288, %c40_289], %246 {strides = array<i32>} : memref<1x64x64xf32, #tpu.memory_space<vmem>>, vector<1x8x8xf32>,
    %c96_290 = arith.constant 96 : index
    %c40_291 = arith.constant 40 : index
    %247 = vector.load %arg5[%c96_290, %c40_291] : memref<128x64xf32, #tpu.memory_space<vmem>>, vector<16x8xf32>
    %cst_292 = arith.constant dense<0.000000e+00> : vector<8x8xf32>
    %248 = tpu.matmul %216, %247, %cst_292 {dimension_numbers = #tpu.dot_dimension_numbers<[1], [0], [0], [1], [0, 0, 1, 1], [], []>} : vector<8x16xf32>, vector<16x8xf32>, vector<8x8xf32> -> vector<8x8xf32>
    %c0_293 = arith.constant 0 : index
    %c48_294 = arith.constant 48 : index
    %c40_295 = arith.constant 40 : index
    %249 = vector.load %arg4[%c0_293, %c48_294, %c40_295] : memref<1x64x64xf32, #tpu.memory_space<vmem>>, vector<1x8x8xf32>
    %250 = vector.shape_cast %249 : vector<1x8x8xf32> to vector<8x8xf32>
    %251 = vector.shape_cast %248 : vector<8x8xf32> to vector<1x8x8xf32>
    tpu.vector_store %arg4[%c0_293, %c48_294, %c40_295], %251 {strides = array<i32>} : memref<1x64x64xf32, #tpu.memory_space<vmem>>, vector<1x8x8xf32>,
    %c112_296 = arith.constant 112 : index
    %c40_297 = arith.constant 40 : index
    %252 = vector.load %arg5[%c112_296, %c40_297] : memref<128x64xf32, #tpu.memory_space<vmem>>, vector<16x8xf32>
    %cst_298 = arith.constant dense<0.000000e+00> : vector<8x8xf32>
    %253 = tpu.matmul %216, %252, %cst_298 {dimension_numbers = #tpu.dot_dimension_numbers<[1], [0], [0], [1], [0, 0, 1, 1], [], []>} : vector<8x16xf32>, vector<16x8xf32>, vector<8x8xf32> -> vector<8x8xf32>
    %c0_299 = arith.constant 0 : index
    %c56_300 = arith.constant 56 : index
    %c40_301 = arith.constant 40 : index
    %254 = vector.load %arg4[%c0_299, %c56_300, %c40_301] : memref<1x64x64xf32, #tpu.memory_space<vmem>>, vector<1x8x8xf32>
    %255 = vector.shape_cast %254 : vector<1x8x8xf32> to vector<8x8xf32>
    %256 = vector.shape_cast %253 : vector<8x8xf32> to vector<1x8x8xf32>
    tpu.vector_store %arg4[%c0_299, %c56_300, %c40_301], %256 {strides = array<i32>} : memref<1x64x64xf32, #tpu.memory_space<vmem>>, vector<1x8x8xf32>,
    %c0_302 = arith.constant 0 : index
    %c6 = arith.constant 6 : index
    %c0_303 = arith.constant 0 : index
    %c0_304 = arith.constant 0 : index
    %257 = vector.load %arg2[%c0_302, %c6, %c0_303, %c0_304] : memref<1x8x8x16xf32, #tpu.memory_space<vmem>>, vector<1x1x8x16xf32>
    %258 = vector.shape_cast %257 : vector<1x1x8x16xf32> to vector<8x16xf32>
    %c0_305 = arith.constant 0 : index
    %c48_306 = arith.constant 48 : index
    %259 = vector.load %arg5[%c0_305, %c48_306] : memref<128x64xf32, #tpu.memory_space<vmem>>, vector<16x8xf32>
    %cst_307 = arith.constant dense<0.000000e+00> : vector<8x8xf32>
    %260 = tpu.matmul %258, %259, %cst_307 {dimension_numbers = #tpu.dot_dimension_numbers<[1], [0], [0], [1], [0, 0, 1, 1], [], []>} : vector<8x16xf32>, vector<16x8xf32>, vector<8x8xf32> -> vector<8x8xf32>
    %c0_308 = arith.constant 0 : index
    %c0_309 = arith.constant 0 : index
    %c48_310 = arith.constant 48 : index
    %261 = vector.load %arg4[%c0_308, %c0_309, %c48_310] : memref<1x64x64xf32, #tpu.memory_space<vmem>>, vector<1x8x8xf32>
    %262 = vector.shape_cast %261 : vector<1x8x8xf32> to vector<8x8xf32>
    %263 = vector.shape_cast %260 : vector<8x8xf32> to vector<1x8x8xf32>
    tpu.vector_store %arg4[%c0_308, %c0_309, %c48_310], %263 {strides = array<i32>} : memref<1x64x64xf32, #tpu.memory_space<vmem>>, vector<1x8x8xf32>,
    %c16_311 = arith.constant 16 : index
    %c48_312 = arith.constant 48 : index
    %264 = vector.load %arg5[%c16_311, %c48_312] : memref<128x64xf32, #tpu.memory_space<vmem>>, vector<16x8xf32>
    %cst_313 = arith.constant dense<0.000000e+00> : vector<8x8xf32>
    %265 = tpu.matmul %258, %264, %cst_313 {dimension_numbers = #tpu.dot_dimension_numbers<[1], [0], [0], [1], [0, 0, 1, 1], [], []>} : vector<8x16xf32>, vector<16x8xf32>, vector<8x8xf32> -> vector<8x8xf32>
    %c0_314 = arith.constant 0 : index
    %c8_315 = arith.constant 8 : index
    %c48_316 = arith.constant 48 : index
    %266 = vector.load %arg4[%c0_314, %c8_315, %c48_316] : memref<1x64x64xf32, #tpu.memory_space<vmem>>, vector<1x8x8xf32>
    %267 = vector.shape_cast %266 : vector<1x8x8xf32> to vector<8x8xf32>
    %268 = vector.shape_cast %265 : vector<8x8xf32> to vector<1x8x8xf32>
    tpu.vector_store %arg4[%c0_314, %c8_315, %c48_316], %268 {strides = array<i32>} : memref<1x64x64xf32, #tpu.memory_space<vmem>>, vector<1x8x8xf32>,
    %c32_317 = arith.constant 32 : index
    %c48_318 = arith.constant 48 : index
    %269 = vector.load %arg5[%c32_317, %c48_318] : memref<128x64xf32, #tpu.memory_space<vmem>>, vector<16x8xf32>
    %cst_319 = arith.constant dense<0.000000e+00> : vector<8x8xf32>
    %270 = tpu.matmul %258, %269, %cst_319 {dimension_numbers = #tpu.dot_dimension_numbers<[1], [0], [0], [1], [0, 0, 1, 1], [], []>} : vector<8x16xf32>, vector<16x8xf32>, vector<8x8xf32> -> vector<8x8xf32>
    %c0_320 = arith.constant 0 : index
    %c16_321 = arith.constant 16 : index
    %c48_322 = arith.constant 48 : index
    %271 = vector.load %arg4[%c0_320, %c16_321, %c48_322] : memref<1x64x64xf32, #tpu.memory_space<vmem>>, vector<1x8x8xf32>
    %272 = vector.shape_cast %271 : vector<1x8x8xf32> to vector<8x8xf32>
    %273 = vector.shape_cast %270 : vector<8x8xf32> to vector<1x8x8xf32>
    tpu.vector_store %arg4[%c0_320, %c16_321, %c48_322], %273 {strides = array<i32>} : memref<1x64x64xf32, #tpu.memory_space<vmem>>, vector<1x8x8xf32>,
    %c48_323 = arith.constant 48 : index
    %c48_324 = arith.constant 48 : index
    %274 = vector.load %arg5[%c48_323, %c48_324] : memref<128x64xf32, #tpu.memory_space<vmem>>, vector<16x8xf32>
    %cst_325 = arith.constant dense<0.000000e+00> : vector<8x8xf32>
    %275 = tpu.matmul %258, %274, %cst_325 {dimension_numbers = #tpu.dot_dimension_numbers<[1], [0], [0], [1], [0, 0, 1, 1], [], []>} : vector<8x16xf32>, vector<16x8xf32>, vector<8x8xf32> -> vector<8x8xf32>
    %c0_326 = arith.constant 0 : index
    %c24_327 = arith.constant 24 : index
    %c48_328 = arith.constant 48 : index
    %276 = vector.load %arg4[%c0_326, %c24_327, %c48_328] : memref<1x64x64xf32, #tpu.memory_space<vmem>>, vector<1x8x8xf32>
    %277 = vector.shape_cast %276 : vector<1x8x8xf32> to vector<8x8xf32>
    %278 = vector.shape_cast %275 : vector<8x8xf32> to vector<1x8x8xf32>
    tpu.vector_store %arg4[%c0_326, %c24_327, %c48_328], %278 {strides = array<i32>} : memref<1x64x64xf32, #tpu.memory_space<vmem>>, vector<1x8x8xf32>,
    %c64_329 = arith.constant 64 : index
    %c48_330 = arith.constant 48 : index
    %279 = vector.load %arg5[%c64_329, %c48_330] : memref<128x64xf32, #tpu.memory_space<vmem>>, vector<16x8xf32>
    %cst_331 = arith.constant dense<0.000000e+00> : vector<8x8xf32>
    %280 = tpu.matmul %258, %279, %cst_331 {dimension_numbers = #tpu.dot_dimension_numbers<[1], [0], [0], [1], [0, 0, 1, 1], [], []>} : vector<8x16xf32>, vector<16x8xf32>, vector<8x8xf32> -> vector<8x8xf32>
    %c0_332 = arith.constant 0 : index
    %c32_333 = arith.constant 32 : index
    %c48_334 = arith.constant 48 : index
    %281 = vector.load %arg4[%c0_332, %c32_333, %c48_334] : memref<1x64x64xf32, #tpu.memory_space<vmem>>, vector<1x8x8xf32>
    %282 = vector.shape_cast %281 : vector<1x8x8xf32> to vector<8x8xf32>
    %283 = vector.shape_cast %280 : vector<8x8xf32> to vector<1x8x8xf32>
    tpu.vector_store %arg4[%c0_332, %c32_333, %c48_334], %283 {strides = array<i32>} : memref<1x64x64xf32, #tpu.memory_space<vmem>>, vector<1x8x8xf32>,
    %c80_335 = arith.constant 80 : index
    %c48_336 = arith.constant 48 : index
    %284 = vector.load %arg5[%c80_335, %c48_336] : memref<128x64xf32, #tpu.memory_space<vmem>>, vector<16x8xf32>
    %cst_337 = arith.constant dense<0.000000e+00> : vector<8x8xf32>
    %285 = tpu.matmul %258, %284, %cst_337 {dimension_numbers = #tpu.dot_dimension_numbers<[1], [0], [0], [1], [0, 0, 1, 1], [], []>} : vector<8x16xf32>, vector<16x8xf32>, vector<8x8xf32> -> vector<8x8xf32>
    %c0_338 = arith.constant 0 : index
    %c40_339 = arith.constant 40 : index
    %c48_340 = arith.constant 48 : index
    %286 = vector.load %arg4[%c0_338, %c40_339, %c48_340] : memref<1x64x64xf32, #tpu.memory_space<vmem>>, vector<1x8x8xf32>
    %287 = vector.shape_cast %286 : vector<1x8x8xf32> to vector<8x8xf32>
    %288 = vector.shape_cast %285 : vector<8x8xf32> to vector<1x8x8xf32>
    tpu.vector_store %arg4[%c0_338, %c40_339, %c48_340], %288 {strides = array<i32>} : memref<1x64x64xf32, #tpu.memory_space<vmem>>, vector<1x8x8xf32>,
    %c96_341 = arith.constant 96 : index
    %c48_342 = arith.constant 48 : index
    %289 = vector.load %arg5[%c96_341, %c48_342] : memref<128x64xf32, #tpu.memory_space<vmem>>, vector<16x8xf32>
    %cst_343 = arith.constant dense<0.000000e+00> : vector<8x8xf32>
    %290 = tpu.matmul %258, %289, %cst_343 {dimension_numbers = #tpu.dot_dimension_numbers<[1], [0], [0], [1], [0, 0, 1, 1], [], []>} : vector<8x16xf32>, vector<16x8xf32>, vector<8x8xf32> -> vector<8x8xf32>
    %c0_344 = arith.constant 0 : index
    %c48_345 = arith.constant 48 : index
    %c48_346 = arith.constant 48 : index
    %291 = vector.load %arg4[%c0_344, %c48_345, %c48_346] : memref<1x64x64xf32, #tpu.memory_space<vmem>>, vector<1x8x8xf32>
    %292 = vector.shape_cast %291 : vector<1x8x8xf32> to vector<8x8xf32>
    %293 = vector.shape_cast %290 : vector<8x8xf32> to vector<1x8x8xf32>
    tpu.vector_store %arg4[%c0_344, %c48_345, %c48_346], %293 {strides = array<i32>} : memref<1x64x64xf32, #tpu.memory_space<vmem>>, vector<1x8x8xf32>,
    %c112_347 = arith.constant 112 : index
    %c48_348 = arith.constant 48 : index
    %294 = vector.load %arg5[%c112_347, %c48_348] : memref<128x64xf32, #tpu.memory_space<vmem>>, vector<16x8xf32>
    %cst_349 = arith.constant dense<0.000000e+00> : vector<8x8xf32>
    %295 = tpu.matmul %258, %294, %cst_349 {dimension_numbers = #tpu.dot_dimension_numbers<[1], [0], [0], [1], [0, 0, 1, 1], [], []>} : vector<8x16xf32>, vector<16x8xf32>, vector<8x8xf32> -> vector<8x8xf32>
    %c0_350 = arith.constant 0 : index
    %c56_351 = arith.constant 56 : index
    %c48_352 = arith.constant 48 : index
    %296 = vector.load %arg4[%c0_350, %c56_351, %c48_352] : memref<1x64x64xf32, #tpu.memory_space<vmem>>, vector<1x8x8xf32>
    %297 = vector.shape_cast %296 : vector<1x8x8xf32> to vector<8x8xf32>
    %298 = vector.shape_cast %295 : vector<8x8xf32> to vector<1x8x8xf32>
    tpu.vector_store %arg4[%c0_350, %c56_351, %c48_352], %298 {strides = array<i32>} : memref<1x64x64xf32, #tpu.memory_space<vmem>>, vector<1x8x8xf32>,
    %c0_353 = arith.constant 0 : index
    %c7 = arith.constant 7 : index
    %c0_354 = arith.constant 0 : index
    %c0_355 = arith.constant 0 : index
    %299 = vector.load %arg2[%c0_353, %c7, %c0_354, %c0_355] : memref<1x8x8x16xf32, #tpu.memory_space<vmem>>, vector<1x1x8x16xf32>
    %300 = vector.shape_cast %299 : vector<1x1x8x16xf32> to vector<8x16xf32>
    %c0_356 = arith.constant 0 : index
    %c56_357 = arith.constant 56 : index
    %301 = vector.load %arg5[%c0_356, %c56_357] : memref<128x64xf32, #tpu.memory_space<vmem>>, vector<16x8xf32>
    %cst_358 = arith.constant dense<0.000000e+00> : vector<8x8xf32>
    %302 = tpu.matmul %300, %301, %cst_358 {dimension_numbers = #tpu.dot_dimension_numbers<[1], [0], [0], [1], [0, 0, 1, 1], [], []>} : vector<8x16xf32>, vector<16x8xf32>, vector<8x8xf32> -> vector<8x8xf32>
    %c0_359 = arith.constant 0 : index
    %c0_360 = arith.constant 0 : index
    %c56_361 = arith.constant 56 : index
    %303 = vector.load %arg4[%c0_359, %c0_360, %c56_361] : memref<1x64x64xf32, #tpu.memory_space<vmem>>, vector<1x8x8xf32>
    %304 = vector.shape_cast %303 : vector<1x8x8xf32> to vector<8x8xf32>
    %305 = vector.shape_cast %302 : vector<8x8xf32> to vector<1x8x8xf32>
    tpu.vector_store %arg4[%c0_359, %c0_360, %c56_361], %305 {strides = array<i32>} : memref<1x64x64xf32, #tpu.memory_space<vmem>>, vector<1x8x8xf32>,
    %c16_362 = arith.constant 16 : index
    %c56_363 = arith.constant 56 : index
    %306 = vector.load %arg5[%c16_362, %c56_363] : memref<128x64xf32, #tpu.memory_space<vmem>>, vector<16x8xf32>
    %cst_364 = arith.constant dense<0.000000e+00> : vector<8x8xf32>
    %307 = tpu.matmul %300, %306, %cst_364 {dimension_numbers = #tpu.dot_dimension_numbers<[1], [0], [0], [1], [0, 0, 1, 1], [], []>} : vector<8x16xf32>, vector<16x8xf32>, vector<8x8xf32> -> vector<8x8xf32>
    %c0_365 = arith.constant 0 : index
    %c8_366 = arith.constant 8 : index
    %c56_367 = arith.constant 56 : index
    %308 = vector.load %arg4[%c0_365, %c8_366, %c56_367] : memref<1x64x64xf32, #tpu.memory_space<vmem>>, vector<1x8x8xf32>
    %309 = vector.shape_cast %308 : vector<1x8x8xf32> to vector<8x8xf32>
    %310 = vector.shape_cast %307 : vector<8x8xf32> to vector<1x8x8xf32>
    tpu.vector_store %arg4[%c0_365, %c8_366, %c56_367], %310 {strides = array<i32>} : memref<1x64x64xf32, #tpu.memory_space<vmem>>, vector<1x8x8xf32>,
    %c32_368 = arith.constant 32 : index
    %c56_369 = arith.constant 56 : index
    %311 = vector.load %arg5[%c32_368, %c56_369] : memref<128x64xf32, #tpu.memory_space<vmem>>, vector<16x8xf32>
    %cst_370 = arith.constant dense<0.000000e+00> : vector<8x8xf32>
    %312 = tpu.matmul %300, %311, %cst_370 {dimension_numbers = #tpu.dot_dimension_numbers<[1], [0], [0], [1], [0, 0, 1, 1], [], []>} : vector<8x16xf32>, vector<16x8xf32>, vector<8x8xf32> -> vector<8x8xf32>
    %c0_371 = arith.constant 0 : index
    %c16_372 = arith.constant 16 : index
    %c56_373 = arith.constant 56 : index
    %313 = vector.load %arg4[%c0_371, %c16_372, %c56_373] : memref<1x64x64xf32, #tpu.memory_space<vmem>>, vector<1x8x8xf32>
    %314 = vector.shape_cast %313 : vector<1x8x8xf32> to vector<8x8xf32>
    %315 = vector.shape_cast %312 : vector<8x8xf32> to vector<1x8x8xf32>
    tpu.vector_store %arg4[%c0_371, %c16_372, %c56_373], %315 {strides = array<i32>} : memref<1x64x64xf32, #tpu.memory_space<vmem>>, vector<1x8x8xf32>,
    %c48_374 = arith.constant 48 : index
    %c56_375 = arith.constant 56 : index
    %316 = vector.load %arg5[%c48_374, %c56_375] : memref<128x64xf32, #tpu.memory_space<vmem>>, vector<16x8xf32>
    %cst_376 = arith.constant dense<0.000000e+00> : vector<8x8xf32>
    %317 = tpu.matmul %300, %316, %cst_376 {dimension_numbers = #tpu.dot_dimension_numbers<[1], [0], [0], [1], [0, 0, 1, 1], [], []>} : vector<8x16xf32>, vector<16x8xf32>, vector<8x8xf32> -> vector<8x8xf32>
    %c0_377 = arith.constant 0 : index
    %c24_378 = arith.constant 24 : index
    %c56_379 = arith.constant 56 : index
    %318 = vector.load %arg4[%c0_377, %c24_378, %c56_379] : memref<1x64x64xf32, #tpu.memory_space<vmem>>, vector<1x8x8xf32>
    %319 = vector.shape_cast %318 : vector<1x8x8xf32> to vector<8x8xf32>
    %320 = vector.shape_cast %317 : vector<8x8xf32> to vector<1x8x8xf32>
    tpu.vector_store %arg4[%c0_377, %c24_378, %c56_379], %320 {strides = array<i32>} : memref<1x64x64xf32, #tpu.memory_space<vmem>>, vector<1x8x8xf32>,
    %c64_380 = arith.constant 64 : index
    %c56_381 = arith.constant 56 : index
    %321 = vector.load %arg5[%c64_380, %c56_381] : memref<128x64xf32, #tpu.memory_space<vmem>>, vector<16x8xf32>
    %cst_382 = arith.constant dense<0.000000e+00> : vector<8x8xf32>
    %322 = tpu.matmul %300, %321, %cst_382 {dimension_numbers = #tpu.dot_dimension_numbers<[1], [0], [0], [1], [0, 0, 1, 1], [], []>} : vector<8x16xf32>, vector<16x8xf32>, vector<8x8xf32> -> vector<8x8xf32>
    %c0_383 = arith.constant 0 : index
    %c32_384 = arith.constant 32 : index
    %c56_385 = arith.constant 56 : index
    %323 = vector.load %arg4[%c0_383, %c32_384, %c56_385] : memref<1x64x64xf32, #tpu.memory_space<vmem>>, vector<1x8x8xf32>
    %324 = vector.shape_cast %323 : vector<1x8x8xf32> to vector<8x8xf32>
    %325 = vector.shape_cast %322 : vector<8x8xf32> to vector<1x8x8xf32>
    tpu.vector_store %arg4[%c0_383, %c32_384, %c56_385], %325 {strides = array<i32>} : memref<1x64x64xf32, #tpu.memory_space<vmem>>, vector<1x8x8xf32>,
    %c80_386 = arith.constant 80 : index
    %c56_387 = arith.constant 56 : index
    %326 = vector.load %arg5[%c80_386, %c56_387] : memref<128x64xf32, #tpu.memory_space<vmem>>, vector<16x8xf32>
    %cst_388 = arith.constant dense<0.000000e+00> : vector<8x8xf32>
    %327 = tpu.matmul %300, %326, %cst_388 {dimension_numbers = #tpu.dot_dimension_numbers<[1], [0], [0], [1], [0, 0, 1, 1], [], []>} : vector<8x16xf32>, vector<16x8xf32>, vector<8x8xf32> -> vector<8x8xf32>
    %c0_389 = arith.constant 0 : index
    %c40_390 = arith.constant 40 : index
    %c56_391 = arith.constant 56 : index
    %328 = vector.load %arg4[%c0_389, %c40_390, %c56_391] : memref<1x64x64xf32, #tpu.memory_space<vmem>>, vector<1x8x8xf32>
    %329 = vector.shape_cast %328 : vector<1x8x8xf32> to vector<8x8xf32>
    %330 = vector.shape_cast %327 : vector<8x8xf32> to vector<1x8x8xf32>
    tpu.vector_store %arg4[%c0_389, %c40_390, %c56_391], %330 {strides = array<i32>} : memref<1x64x64xf32, #tpu.memory_space<vmem>>, vector<1x8x8xf32>,
    %c96_392 = arith.constant 96 : index
    %c56_393 = arith.constant 56 : index
    %331 = vector.load %arg5[%c96_392, %c56_393] : memref<128x64xf32, #tpu.memory_space<vmem>>, vector<16x8xf32>
    %cst_394 = arith.constant dense<0.000000e+00> : vector<8x8xf32>
    %332 = tpu.matmul %300, %331, %cst_394 {dimension_numbers = #tpu.dot_dimension_numbers<[1], [0], [0], [1], [0, 0, 1, 1], [], []>} : vector<8x16xf32>, vector<16x8xf32>, vector<8x8xf32> -> vector<8x8xf32>
    %c0_395 = arith.constant 0 : index
    %c48_396 = arith.constant 48 : index
    %c56_397 = arith.constant 56 : index
    %333 = vector.load %arg4[%c0_395, %c48_396, %c56_397] : memref<1x64x64xf32, #tpu.memory_space<vmem>>, vector<1x8x8xf32>
    %334 = vector.shape_cast %333 : vector<1x8x8xf32> to vector<8x8xf32>
    %335 = vector.shape_cast %332 : vector<8x8xf32> to vector<1x8x8xf32>
    tpu.vector_store %arg4[%c0_395, %c48_396, %c56_397], %335 {strides = array<i32>} : memref<1x64x64xf32, #tpu.memory_space<vmem>>, vector<1x8x8xf32>,
    %c112_398 = arith.constant 112 : index
    %c56_399 = arith.constant 56 : index
    %336 = vector.load %arg5[%c112_398, %c56_399] : memref<128x64xf32, #tpu.memory_space<vmem>>, vector<16x8xf32>
    %cst_400 = arith.constant dense<0.000000e+00> : vector<8x8xf32>
    %337 = tpu.matmul %300, %336, %cst_400 {dimension_numbers = #tpu.dot_dimension_numbers<[1], [0], [0], [1], [0, 0, 1, 1], [], []>} : vector<8x16xf32>, vector<16x8xf32>, vector<8x8xf32> -> vector<8x8xf32>
    %c0_401 = arith.constant 0 : index
    %c56_402 = arith.constant 56 : index
    %c56_403 = arith.constant 56 : index
    %338 = vector.load %arg4[%c0_401, %c56_402, %c56_403] : memref<1x64x64xf32, #tpu.memory_space<vmem>>, vector<1x8x8xf32>
    %339 = vector.shape_cast %338 : vector<1x8x8xf32> to vector<8x8xf32>
    %340 = vector.shape_cast %337 : vector<8x8xf32> to vector<1x8x8xf32>
    tpu.vector_store %arg4[%c0_401, %c56_402, %c56_403], %340 {strides = array<i32>} : memref<1x64x64xf32, #tpu.memory_space<vmem>>, vector<1x8x8xf32>,
    return
  }
  func.func @transform_0(%arg0: i32) -> (i32, i32) {
    %c0_i32 = arith.constant 0 : i32
    %c0_i32_0 = arith.constant 0 : i32
    %c0_i32_1 = arith.constant 0 : i32
    return %c0_i32, %c0_i32_0 : i32, i32
  }
  func.func @transform_1(%arg0: i32) -> (i32, i32, i32, i32) {
    %c0_i32 = arith.constant 0 : i32
    %c0_i32_0 = arith.constant 0 : i32
    %c0_i32_1 = arith.constant 0 : i32
    %c0_i32_2 = arith.constant 0 : i32
    return %arg0, %c0_i32, %c0_i32_0, %c0_i32_1 : i32, i32, i32, i32
  }
  func.func @transform_2(%arg0: i32) -> (i32, i32, i32) {
    %c0_i32 = arith.constant 0 : i32
    %c0_i32_0 = arith.constant 0 : i32
    %c0_i32_1 = arith.constant 0 : i32
    return %arg0, %c0_i32, %c0_i32_0 : i32, i32, i32
  }
  func.func @transform_3(%arg0: i32) -> (i32, i32, i32) {
    %c0_i32 = arith.constant 0 : i32
    %c0_i32_0 = arith.constant 0 : i32
    %c0_i32_1 = arith.constant 0 : i32
    return %arg0, %c0_i32, %c0_i32_0 : i32, i32, i32
  }
}

</mosaic_0001>

<bundles_post_ra>
// kernel: tpu_custom_call.1
= control target key start
LH: loop header
LB: loop body
LE: loop exit
PB: predicated region body
PF: predicated region fallthrough
CT: control target
= control target key end

     0   :  { %vm33_vm0 = vcmask 130048   ;;  %s3339_s0 = inlined_call_operand.vmem [shape: f32[128,16], index: 0, kind: input, shape index: {}]   ;;  %s3340_s1 = inlined_call_operand.vmem [shape: f32[1,8,8,16], index: 1, kind: input, shape index: {}]   ;;  %s3341_s2 = inlined_call_operand.vmem [shape: f32[1,16,64], index: 2, kind: input, shape index: {}]   ;;  %s3342_s3 = inlined_call_operand.hbm [shape: f32[1,64,64], index: 3, kind: output, shape index: {}]  }
   0x1   :  { %v32_v0 = vld [vmem:[%s3341_s2 + $0x8] sm:$0xff]  ;;  %v31_v1 = vld [vmem:[%s3341_s2] sm:$0xff] }
   0x2   :  { %96 = vmatpush.msra.mxu0 %v32_v0  ;;  %v15_v2 = vld [vmem:[%s3339_s0] sm:$0xff] }
   0x3   :  { %8 = vsyncpa [#allocation4], 0  ;;  %v16_v3 = vld [vmem:[%s3339_s0 + $0x8] sm:$0xff]  ;;  %v17_v4 = vld [vmem:[%s3339_s0 + $0x10] sm:$0xff]  ;;  %vm147_vm1 = vcmask 523264   ;;  %s2782_s20 = smov 120  }
   0x4   :  { %97 = vmatpush.msra.mxu0 %v31_v1  ;;  %v18_v5 = vld [vmem:[%s3339_s0 + $0x18] sm:$0xff]  ;;  %v19_v6 = vld [vmem:[%s3339_s0 + $0x20] sm:$0xff]  ;;  %v20_v7 = vld [vmem:[%s3339_s0 + $0x28] sm:$0xff]  ;;  %s2784_s22 = smov 104   ;;  %s2785_s23 = smov 96   ;;  %vm190_vm2 = vcmask 64512  }
   0x5   :  { %2373 = vmatmul.msk.f32.vlgmr.msra.gmra.mxu0 %vm33_vm0, %v15_v2  ;;  %v21_v8 = vld [vmem:[%s3339_s0 + $0x30] sm:$0xff]  ;;  %v22_v9 = vld [vmem:[%s3339_s0 + $0x38] sm:$0xff]  ;;  %v23_v10 = vld [vmem:[%s3339_s0 + $0x40] sm:$0xff]  ;;  %s2786_s24 = smov 88   ;;  %s2787_s27 = smov 80   ;;  %vm392_vm3 = vcmask 130112  }
   0x6   :  { %v24_v11 = vld [vmem:[%s3339_s0 + $0x48] sm:$0xff]  ;;  %v25_v12 = vld [vmem:[%s3339_s0 + $0x50] sm:$0xff]  ;;  %v26_v13 = vld [vmem:[%s3339_s0 + $0x58] sm:$0xff]  ;;  %s2788_s28 = smov 72   ;;  %s2790_s14 = smov 48   ;;  %vm678_vm4 = vcmask 195712  }
   0x7   :  { %v27_v14 = vld [vmem:[%s3339_s0 + $0x60] sm:$0xff]  ;;  %v28_v15 = vld [vmem:[%s3339_s0 + $0x68] sm:$0xff]  ;;  %v29_v16 = vld [vmem:[%s3339_s0 + $0x70] sm:$0xff]  ;;  %s2791_s15 = smov 56   ;;  %s2792_s16 = smov 16   ;;  %vm964_vm5 = vcmask 261312  }
   0x8   :  { %v30_v17 = vld [vmem:[%s3339_s0 + $0x78] sm:$0xff]  ;;  %s2783_s0 = smov 112   ;;  %v164_v53 = vld [vmem:[%s3340_s1] sm:$0xff]  ;;  %s2793_s17 = smov 24   ;;  %vm1250_vm6 = vcmask 326912   ;;  %vm1536_vm7 = vcmask 392512  }
   0x9   :  { %s2794_s18 = smov 32   ;;  %s2795_s19 = smov 40   ;;  %vm1822_vm8 = vcmask 458112   ;;  %vm2108_vm9 = vcmask 523712  }
   0xa   :  { %s2361_s21 = sshll.u32 %s3342_s3, 4  ;;  %s2796_s2 = smov [#allocation3]   ;;  %s2362_s21 = int_to_ptr.hbm [resolvable:$true] %s2361_s21 }
   0xd   :  { %2374 = vmatmul.msk.f32.gmra.mxu0 %vm33_vm0, %v16_v3 }
  0x15   :  { %2375 = vmatmul.msk.f32.gmra.mxu0 %vm33_vm0, %v17_v4 }
  0x1d   :  { %2376 = vmatmul.msk.f32.gmra.mxu0 %vm33_vm0, %v18_v5 }
  0x25   :  { %2377 = vmatmul.msk.f32.gmra.mxu0 %vm33_vm0, %v19_v6 }
  0x2d   :  { %2378 = vmatmul.msk.f32.gmra.mxu0 %vm33_vm0, %v20_v7 }
  0x35   :  { %2379 = vmatmul.msk.f32.gmra.mxu0 %vm33_vm0, %v21_v8 }
  0x3d   :  { %2380 = vmatmul.msk.f32.gmra.mxu0 %vm33_vm0, %v22_v9 }
  0x45   :  { %2381 = vmatmul.msk.f32.gmra.mxu0 %vm33_vm0, %v23_v10 }
  0x4d   :  { %2382 = vmatmul.msk.f32.gmra.mxu0 %vm33_vm0, %v24_v11 }
  0x55   :  { %2383 = vmatmul.msk.f32.gmra.mxu0 %vm33_vm0, %v25_v12 }
  0x5d   :  { %2384 = vmatmul.msk.f32.gmra.mxu0 %vm33_vm0, %v26_v13 }
  0x65   :  { %2385 = vmatmul.msk.f32.gmra.mxu0 %vm33_vm0, %v27_v14 }
  0x6d   :  { %2386 = vmatmul.msk.f32.gmra.mxu0 %vm33_vm0, %v28_v15 }
  0x75   :  { %2387 = vmatmul.msk.f32.gmra.mxu0 %vm33_vm0, %v29_v16 }
  0x7d   :  { %2388 = vmatmul.msk.f32.gmra.mxu0 %vm33_vm0, %v30_v17 }
  0x82   :  { %v99_v18 = vpop.f32.mrf.mxu0 }
  0x83   :  { %148 = vst.msk [vmem:[#allocation2] sm:$0xff] %vm147_vm1, %v99_v18 }
  0x8a   :  { %v102_v19 = vpop.f32.mrf.mxu0  ;;  %v355_v22 = vld [vmem:[#allocation2] sm:$0xff] }
  0x8b   :  { %149 = vst.msk [vmem:[#allocation2 + $0x8] sm:$0xff] %vm147_vm1, %v102_v19 }
  0x92   :  { %v105_v20 = vpop.f32.mrf.mxu0  ;;  %v166_v21 = vld [vmem:[#allocation2 + $0x8] sm:$0xff] }
  0x93   :  { %150 = vst.msk [vmem:[#allocation2 + $0x10] sm:$0xff] %vm147_vm1, %v105_v20  ;;  %184 = vmatpush.msra.mxu1 %v166_v21  ;;  %v2891_v23 = vpack.i.bf16 %v166_v21, %v355_v22 }
  0x95   :  { %2477 = vrot.lane.b32.xlu0 %v2891_v23, %s2782_s20  ;;  %185 = vmatpush.msra.mxu1 %v355_v22 }
  0x96   :  { %2389 = vmatmul.msk.f32.vlgmr.msra.gmra.mxu1 %vm33_vm0, %v164_v53 }
  0x9a   :  { %v108_v24 = vpop.f32.mrf.mxu0  ;;  %v2895_v25 = vld [vmem:[#allocation2 + $0x10] sm:$0xff] }
  0x9b   :  { %151 = vst.msk [vmem:[#allocation2 + $0x18] sm:$0xff] %vm147_vm1, %v108_v24  ;;  %v2899_v26 = vpack.i.bf16 %v2895_v25, %v355_v22 }
  0xa2   :  { %v111_v27 = vpop.f32.mrf.mxu0  ;;  %v2901_v28 = vld [vmem:[#allocation2 + $0x18] sm:$0xff] }
  0xa3   :  { %152 = vst.msk [vmem:[#allocation2 + $0x20] sm:$0xff] %vm147_vm1, %v111_v27  ;;  %208 = vmatpush.msra.mxu2 %v2901_v28  ;;  %v2907_v29 = vpack.i.bf16 %v2901_v28, %v2895_v25  ;;  %v2910_v30 = vpack.i.bf16 %v2901_v28, %v166_v21  ;;  %v3070_v21 = vld [vmem:[%s3340_s1 + $0x8] sm:$0xff] }
  0xa5   :  { %2482 = vrot.lane.b32.xlu1 %v2907_v29, %s2782_s20  ;;  %209 = vmatpush.msra.mxu2 %v2895_v25 }
  0xa6   :  { %2390 = vmatmul.msk.f32.vlgmr.msra.gmra.mxu2 %vm33_vm0, %v164_v53 }
  0xaa   :  { %v114_v31 = vpop.f32.mrf.mxu0  ;;  %v2918_v34 = vld [vmem:[#allocation2 + $0x20] sm:$0xff] }
  0xab   :  { %153 = vst.msk [vmem:[#allocation2 + $0x28] sm:$0xff] %vm147_vm1, %v114_v31 }
  0xb2   :  { %v117_v32 = vpop.f32.mrf.mxu0  ;;  %v2916_v33 = vld [vmem:[#allocation2 + $0x28] sm:$0xff] }
  0xb3   :  { %154 = vst.msk [vmem:[#allocation2 + $0x30] sm:$0xff] %vm147_vm1, %v117_v32  ;;  %231 = vmatpush.msra.mxu3 %v2916_v33  ;;  %v2924_v35 = vpack.i.bf16 %v2916_v33, %v2918_v34  ;;  %v2596_v36 = vpack.i.bf16 %v2916_v33, %v2895_v25  ;;  %v2651_v37 = vpack.i.bf16 %v2918_v34, %v2916_v33 }
  0xb5   :  { %2487 = vrot.lane.b32.xlu2 %v2924_v35, %s2782_s20  ;;  %232 = vmatpush.msra.mxu3 %v2918_v34 }
  0xb6   :  { %2391 = vmatmul.msk.f32.vlgmr.msra.gmra.mxu3 %vm33_vm0, %v164_v53 }
  0xba   :  { %v120_v38 = vpop.f32.mrf.mxu0  ;;  %v2933_v39 = vld [vmem:[#allocation2 + $0x30] sm:$0xff] }
  0xbb   :  { %155 = vst.msk [vmem:[#allocation2 + $0x38] sm:$0xff] %vm147_vm1, %v120_v38  ;;  %v2611_v40 = vpack.i.bf16 %v2901_v28, %v2933_v39  ;;  %v2940_v41 = vpack.i.bf16 %v2933_v39, %v2918_v34 }
  0xc2   :  { %v123_v42 = vpop.f32.mrf.mxu0  ;;  %v2942_v43 = vld [vmem:[#allocation2 + $0x38] sm:$0xff] }
  0xc3   :  { %156 = vst.msk [vmem:[#allocation2 + $0x40] sm:$0xff] %vm147_vm1, %v123_v42  ;;  %254 = vmatpush.msrb.mxu1 %v2942_v43  ;;  %v2948_v44 = vpack.i.bf16 %v2942_v43, %v2933_v39  ;;  %v2601_v45 = vpack.i.bf16 %v2918_v34, %v2942_v43  ;;  %v2954_v46 = vpack.i.bf16 %v2942_v43, %v2916_v33 }
  0xc5   :  { %2492 = vrot.lane.b32.xlu0 %v2948_v44, %s2782_s20  ;;  %255 = vmatpush.msrb.mxu1 %v2933_v39 }
  0xc6   :  { %2392 = vmatmul.msk.f32.vlgmr.msrb.gmra.mxu1 %vm33_vm0, %v164_v53 }
  0xca   :  { %v126_v47 = vpop.f32.mrf.mxu0  ;;  %v2959_v48 = vld [vmem:[#allocation2 + $0x40] sm:$0xff] }
  0xcb   :  { %157 = vst.msk [vmem:[#allocation2 + $0x48] sm:$0xff] %vm147_vm1, %v126_v47  ;;  %v2646_v49 = vpack.i.bf16 %v2959_v48, %v2933_v39 }
  0xcd   :  { %2512 = vrot.lane.b32.xlu0 %v2907_v29, %s2783_s0 }
  0xd2   :  { %v129_v50 = vpop.f32.mrf.mxu0  ;;  %v2966_v51 = vld [vmem:[#allocation2 + $0x48] sm:$0xff] }
  0xd3   :  { %158 = vst.msk [vmem:[#allocation2 + $0x50] sm:$0xff] %vm147_vm1, %v129_v50  ;;  %277 = vmatpush.msrb.mxu2 %v2966_v51  ;;  %v2496_v52 = vpack.i.bf16 %v2966_v51, %v2959_v48  ;;  %v2626_v54 = vpack.i.bf16 %v2959_v48, %v2966_v51  ;;  %v2641_v55 = vpack.i.bf16 %v2966_v51, %v2942_v43 }
  0xd5   :  { %2497 = vrot.lane.b32.xlu2 %v2496_v52, %s2782_s20  ;;  %278 = vmatpush.msrb.mxu2 %v2959_v48 }
  0xd6   :  { %2393 = vmatmul.msk.f32.vlgmr.msrb.gmra.mxu2 %vm33_vm0, %v164_v53 }
  0xda   :  { %v132_v56 = vpop.f32.mrf.mxu0  ;;  %v2984_v57 = vld [vmem:[#allocation2 + $0x50] sm:$0xff] }
  0xdb   :  { %159 = vst.msk [vmem:[#allocation2 + $0x58] sm:$0xff] %vm147_vm1, %v132_v56  ;;  %v2989_v58 = vpack.i.bf16 %v2984_v57, %v2959_v48 }
  0xdd   :  { %2517 = vrot.lane.b32.xlu2 %v2924_v35, %s2783_s0 }
  0xe2   :  { %v135_v59 = vpop.f32.mrf.mxu0  ;;  %v2995_v60 = vld [vmem:[#allocation2 + $0x58] sm:$0xff] }
  0xe3   :  { %160 = vst.msk [vmem:[#allocation2 + $0x60] sm:$0xff] %vm147_vm1, %v135_v59  ;;  %300 = vmatpush.msrb.mxu3 %v2995_v60  ;;  %v2536_v61 = vpack.i.bf16 %v2995_v60, %v2984_v57  ;;  %v2666_v62 = vpack.i.bf16 %v2984_v57, %v2995_v60  ;;  %v3005_v63 = vpack.i.bf16 %v2995_v60, %v2966_v51 }
  0xe5   :  { %2537 = vrot.lane.b32.xlu2 %v2536_v61, %s2783_s0  ;;  %2502 = vrot.lane.b32.xlu1 %v2536_v61, %s2782_s20 }
  0xe6   :  { %301 = vmatpush.msrb.mxu3 %v2984_v57 }
  0xe7   :  { %2394 = vmatmul.msk.f32.vlgmr.msrb.gmra.mxu3 %vm33_vm0, %v164_v53 }
  0xea   :  { %v138_v0 = vpop.f32.mrf.mxu0  ;;  %v3014_v3 = vld [vmem:[#allocation2 + $0x60] sm:$0xff] }
  0xeb   :  { %161 = vst.msk [vmem:[#allocation2 + $0x68] sm:$0xff] %vm147_vm1, %v138_v0  ;;  %v2621_v19 = vpack.i.bf16 %v3014_v3, %v2984_v57 }
  0xed   :  { %2507 = vrot.lane.b32.xlu1 %v2891_v23, %s2783_s0 }
  0xf2   :  { %v141_v1 = vpop.f32.mrf.mxu0  ;;  %v308_v2 = vld [vmem:[#allocation2 + $0x68] sm:$0xff] }
  0xf3   :  { %162 = vst.msk [vmem:[#allocation2 + $0x70] sm:$0xff] %vm147_vm1, %v141_v1  ;;  %323 = vmatpush.msra.mxu1 %v308_v2  ;;  %v2526_v4 = vpack.i.bf16 %v308_v2, %v3014_v3  ;;  %v2616_v20 = vpack.i.bf16 %v308_v2, %v2995_v60 }
  0xf5   :  { %2522 = vrot.lane.b32.xlu1 %v2948_v44, %s2783_s0  ;;  %2527 = vrot.lane.b32.xlu0 %v2526_v4, %s2782_s20 }
  0xf6   :  { %324 = vmatpush.msra.mxu1 %v3014_v3 }
  0xf7   :  { %2395 = vmatmul.msk.f32.vlgmr.msra.gmra.mxu1 %vm33_vm0, %v164_v53 }
  0xfa   :  { %v144_v5 = vpop.f32.mrf.mxu0  ;;  %v3026_v6 = vld [vmem:[#allocation2 + $0x70] sm:$0xff] }
  0xfb   :  { %163 = vst.msk [vmem:[#allocation2 + $0x78] sm:$0xff] %vm147_vm1, %v144_v5  ;;  %v2656_v31 = vpack.i.bf16 %v3026_v6, %v3014_v3 }
  0xfd   :  { %2542 = vrot.lane.b32.xlu1 %v2526_v4, %s2783_s0  ;;  %2532 = vrot.lane.b32.xlu0 %v2496_v52, %s2783_s0 }
 0x102   :  { %v605_v7 = vld [vmem:[#allocation2 + $0x78] sm:$0xff] }
 0x103   :  { %v2546_v8 = vpack.i.bf16 %v605_v7, %v3026_v6  ;;  %346 = vmatpush.msra.mxu2 %v605_v7  ;;  %v3029_v9 = vpack.i.bf16 %v605_v7, %v308_v2  ;;  %v2661_v25 = vpack.i.bf16 %v3026_v6, %v605_v7 }
 0x105   :  { %2557 = vrot.lane.b32.xlu1 %v2907_v29, %s2784_s22  ;;  %2562 = vrot.lane.b32.xlu0 %v2924_v35, %s2784_s22 }
 0x106   :  { %2547 = vrot.lane.b32.xlu2 %v2546_v8, %s2782_s20  ;;  %347 = vmatpush.msra.mxu2 %v3026_v6 }
 0x107   :  { %v2478_v10 = vpop.permute.xlu0 %2477  ;;  %2396 = vmatmul.msk.f32.vlgmr.msra.gmra.mxu2 %vm33_vm0, %v164_v53 }
 0x108   :  { %v2480_v11 = vunpack.i.h.bf16 %v2478_v10  ;;  %v2479_v12 = vunpack.i.l.bf16 %v2478_v10 }
 0x10a   :  { %382 = vmatpush.msra.mxu3 %v2480_v11 }
 0x10c   :  { %383 = vmatpush.msra.mxu3 %v2479_v12 }
 0x10d   :  { %2572 = vrot.lane.b32.xlu1 %v2496_v52, %s2784_s22  ;;  %2577 = vrot.lane.b32.xlu0 %v2546_v8, %s2783_s0 }
 0x10e   :  { %2552 = vrot.lane.b32.xlu2 %v2891_v23, %s2784_s22  ;;  %2398 = vmatmul.msk.f32.vlgmr.msra.gmra.mxu3 %vm33_vm0, %v3070_v21 }
 0x10f   :  { %v2488_v13 = vpop.permute.xlu2 %2487 }
 0x110   :  { %v2490_v14 = vunpack.i.h.bf16 %v2488_v13  ;;  %v2489_v15 = vunpack.i.l.bf16 %v2488_v13 }
 0x112   :  { %453 = vmatpush.msrb.mxu2 %v2490_v14 }
 0x114   :  { %454 = vmatpush.msrb.mxu2 %v2489_v15 }
 0x115   :  { %2607 = vrot.lane.b32.xlu1 %v2546_v8, %s2784_s22  ;;  %2582 = vrot.lane.b32.xlu0 %v2536_v61, %s2784_s22 }
 0x116   :  { %2567 = vrot.lane.b32.xlu2 %v2948_v44, %s2784_s22  ;;  %2400 = vmatmul.msk.f32.vlgmr.msrb.gmra.mxu2 %vm33_vm0, %v3070_v21 }
 0x117   :  { %v2483_v16 = vpop.permute.xlu1 %2482 }
 0x118   :  { %v2485_v17 = vunpack.i.h.bf16 %v2483_v16  ;;  %v2484_v18 = vunpack.i.l.bf16 %v2483_v16 }
 0x11a   :  { %418 = vmatpush.msrb.mxu1 %v2485_v17 }
 0x11c   :  { %419 = vmatpush.msrb.mxu1 %v2484_v18 }
 0x11d   :  { %2612 = vrot.lane.b32.xlu1 %v2611_v40, %s2785_s23  ;;  %2592 = vrot.lane.b32.xlu0 %v2891_v23, %s2785_s23 }
 0x11e   :  { %2587 = vrot.lane.b32.xlu2 %v2526_v4, %s2784_s22  ;;  %2399 = vmatmul.msk.f32.vlgmr.msrb.gmra.mxu1 %vm33_vm0, %v3070_v21  ;;  %s2359_s22 = sshll.u32 %s2796_s2, 4  ;;  %s2360_s22 = int_to_ptr.vmem [resolvable:$true] %s2359_s22 }
 0x125   :  { %2627 = vrot.lane.b32.xlu1 %v2626_v54, %s2785_s23  ;;  %2602 = vrot.lane.b32.xlu0 %v2601_v45, %s2785_s23 }
 0x126   :  { %2597 = vrot.lane.b32.xlu2 %v2596_v36, %s2785_s23 }
 0x12d   :  { %2652 = vrot.lane.b32.xlu1 %v2651_v37, %s2786_s24  ;;  %2622 = vrot.lane.b32.xlu0 %v2621_v19, %s2785_s23 }
 0x12e   :  { %2617 = vrot.lane.b32.xlu2 %v2616_v20, %s2785_s23 }
 0x12f   :  { %v2498_v22 = vpop.permute.xlu2 %2497 }
 0x130   :  { %v2500_v23 = vunpack.i.h.bf16 %v2498_v22  ;;  %v2499_v24 = vunpack.i.l.bf16 %v2498_v22 }
 0x132   :  { %523 = vmatpush.msra.mxu1 %v2500_v23 }
 0x134   :  { %524 = vmatpush.msra.mxu1 %v2499_v24 }
 0x135   :  { %2662 = vrot.lane.b32.xlu1 %v2661_v25, %s2785_s23  ;;  %2637 = vrot.lane.b32.xlu0 %v2899_v26, %s2786_s24  ;;  %s2797_s23 = smov 128  }
 0x136   :  { %2632 = vrot.lane.b32.xlu2 %v2910_v30, %s2786_s24  ;;  %2402 = vmatmul.msk.f32.vlgmr.msra.gmra.mxu1 %vm33_vm0, %v3070_v21 }
 0x137   :  { %v2493_v27 = vpop.permute.xlu0 %2492  ;;  %v2518_v32 = vpop.permute.xlu2 %2517 }
 0x138   :  { %v2495_v28 = vunpack.i.h.bf16 %v2493_v27  ;;  %v2494_v29 = vunpack.i.l.bf16 %v2493_v27  ;;  %v2520_v45 = vunpack.i.h.bf16 %v2518_v32  ;;  %v2519_v48 = vunpack.i.l.bf16 %v2518_v32 }
 0x13a   :  { %488 = vmatpush.msrb.mxu3 %v2495_v28 }
 0x13c   :  { %489 = vmatpush.msrb.mxu3 %v2494_v29 }
 0x13d   :  { %2667 = vrot.lane.b32.xlu1 %v2666_v62, %s2786_s24  ;;  %2647 = vrot.lane.b32.xlu0 %v2646_v49, %s2786_s24 }
 0x13e   :  { %2642 = vrot.lane.b32.xlu2 %v2641_v55, %s2786_s24  ;;  %2401 = vmatmul.msk.f32.vlgmr.msrb.gmra.mxu3 %vm33_vm0, %v3070_v21 }
 0x13f   :  { %v2538_v34 = vpop.permute.xlu2 %2537  ;;  %v2513_v37 = vpop.permute.xlu0 %2512 }
 0x140   :  { %v2540_v52 = vunpack.i.h.bf16 %v2538_v34  ;;  %v2514_v55 = vunpack.i.l.bf16 %v2513_v37 }
 0x145   :  { %2682 = vrot.lane.b32.xlu1 %v2910_v30, %s2787_s27  ;;  %2657 = vrot.lane.b32.xlu0 %v2656_v31, %s2786_s24 }
 0x146   :  { %2672 = vrot.lane.b32.xlu2 %v2954_v46, %s2787_s27 }
 0x14d   :  { %2697 = vrot.lane.b32.xlu1 %v2656_v31, %s2787_s27  ;;  %2677 = vrot.lane.b32.xlu0 %v2940_v41, %s2787_s27 }
 0x14e   :  { %2687 = vrot.lane.b32.xlu2 %v3029_v9, %s2786_s24 }
 0x155   :  { %2717 = vrot.lane.b32.xlu1 %v2954_v46, %s2788_s28  ;;  %2707 = vrot.lane.b32.xlu0 %v3029_v9, %s2787_s27 }
 0x156   :  { %2692 = vrot.lane.b32.xlu2 %v2899_v26, %s2787_s27 }
 0x157   :  { %v2503_v33 = vpop.permute.xlu1 %2502 }
 0x158   :  { %v2505_v35 = vunpack.i.h.bf16 %v2503_v33  ;;  %v2504_v36 = vunpack.i.l.bf16 %v2503_v33 }
 0x15a   :  { %558 = vmatpush.msra.mxu2 %v2505_v35 }
 0x15c   :  { %559 = vmatpush.msra.mxu2 %v2504_v36 }
 0x15d   :  { %2732 = vrot.lane.b32.xlu1 %v2899_v26, %s2788_s28  ;;  %2712 = vrot.lane.b32.xlu0 %v2989_v58, %s2787_s27  ;;  %v3120_v26 = vld [vmem:[%s3340_s1 + $0x10] sm:$0xff] }
 0x15e   :  { %2702 = vrot.lane.b32.xlu2 %v3005_v63, %s2787_s27  ;;  %2403 = vmatmul.msk.f32.vlgmr.msra.gmra.mxu2 %vm33_vm0, %v3070_v21 }
 0x15f   :  { %v2508_v38 = vpop.permute.xlu1 %2507 }
 0x160   :  { %v2510_v39 = vunpack.i.h.bf16 %v2508_v38  ;;  %v2548_v40 = vpop.permute.xlu2 %2547  ;;  %v2509_v43 = vunpack.i.l.bf16 %v2508_v38 }
 0x161   :  { %v2550_v42 = vunpack.i.h.bf16 %v2548_v40  ;;  %v2549_v44 = vunpack.i.l.bf16 %v2548_v40 }
 0x162   :  { %668 = vmatpush.msrb.mxu2 %v2510_v39 }
 0x163   :  { %628 = vmatpush.msrb.mxu1 %v2550_v42 }
 0x164   :  { %669 = vmatpush.msrb.mxu2 %v2509_v43 }
 0x165   :  { %629 = vmatpush.msrb.mxu1 %v2549_v44  ;;  %2742 = vrot.lane.b32.xlu1 %v3005_v63, %s2788_s28 }
 0x166   :  { %2727 = vrot.lane.b32.xlu0 %v2910_v30, %s2788_s28  ;;  %2722 = vrot.lane.b32.xlu2 %v2940_v41, %s2788_s28  ;;  %v2539_v30 = vunpack.i.l.bf16 %v2538_v34  ;;  %v2515_v41 = vunpack.i.h.bf16 %v2513_v37  ;;  %v2424_v37 = vld [vmem:[%s3340_s1 + $0x20] sm:$0xff] }
 0x167   :  { %2405 = vmatmul.msk.f32.vlgmr.msrb.gmra.mxu1 %vm33_vm0, %v3070_v21  ;;  %v2523_v46 = vpop.permute.xlu1 %2522  ;;  %v2528_v47 = vpop.permute.xlu0 %2527  ;;  %2407 = vmatmul.msk.f32.vlgmr.msrb.gmra.mxu2 %vm33_vm0, %v3120_v26 }
 0x168   :  { %739 = vmatpush.msra.mxu1 %v2520_v45  ;;  %v2525_v49 = vunpack.i.h.bf16 %v2523_v46  ;;  %v2530_v50 = vunpack.i.h.bf16 %v2528_v47  ;;  %v2553_v51 = vpop.permute.xlu2 %2552  ;;  %v2529_v53 = vunpack.i.l.bf16 %v2528_v47  ;;  %v2524_v54 = vunpack.i.l.bf16 %v2523_v46 }
 0x169   :  { %v2555_v56 = vunpack.i.h.bf16 %v2553_v51  ;;  %v2554_v63 = vunpack.i.l.bf16 %v2553_v51 }
 0x16a   :  { %740 = vmatpush.msra.mxu1 %v2519_v48  ;;  %593 = vmatpush.msra.mxu3 %v2530_v50 }
 0x16b   :  { %774 = vmatpush.msra.mxu2 %v2525_v49 }
 0x16c   :  { %844 = vmatpush.msrb.mxu1 %v2540_v52  ;;  %594 = vmatpush.msra.mxu3 %v2529_v53 }
 0x16d   :  { %775 = vmatpush.msra.mxu2 %v2524_v54  ;;  %2404 = vmatmul.msk.f32.vlgmr.msra.gmra.mxu3 %vm33_vm0, %v3070_v21 }
 0x16e   :  { %845 = vmatpush.msrb.mxu1 %v2539_v30  ;;  %2737 = vrot.lane.b32.xlu0 %v2656_v31, %s2788_s28 }
 0x16f   :  { %704 = vmatpush.msrb.mxu3 %v2515_v41  ;;  %2747 = vrot.lane.b32.xlu2 %v3029_v9, %s2788_s28  ;;  %v2543_v57 = vpop.permute.xlu1 %2542  ;;  %v2533_v59 = vpop.permute.xlu0 %2532 }
 0x170   :  { %2409 = vmatmul.msk.f32.vlgmr.msra.gmra.mxu1 %vm33_vm0, %v3120_v26  ;;  %v2545_v60 = vunpack.i.h.bf16 %v2543_v57  ;;  %v2535_v61 = vunpack.i.h.bf16 %v2533_v59  ;;  %v2568_v62 = vpop.permute.xlu2 %2567  ;;  %2410 = vmatmul.msk.f32.vlgmr.msra.gmra.mxu2 %vm33_vm0, %v3120_v26  ;;  %v2544_v0 = vunpack.i.l.bf16 %v2543_v57  ;;  %v2534_v1 = vunpack.i.l.bf16 %v2533_v59 }
 0x171   :  { %954 = vmatpush.msra.mxu1 %v2555_v56  ;;  %705 = vmatpush.msrb.mxu3 %v2514_v55  ;;  %v2570_v2 = vunpack.i.h.bf16 %v2568_v62  ;;  %v2569_v7 = vunpack.i.l.bf16 %v2568_v62 }
 0x172   :  { %879 = vmatpush.msrb.mxu2 %v2545_v60 }
 0x173   :  { %809 = vmatpush.msra.mxu3 %v2535_v61  ;;  %955 = vmatpush.msra.mxu1 %v2554_v63  ;;  %v3178_v61 = vld [vmem:[%s3340_s1 + $0x28] sm:$0xff] }
 0x174   :  { %880 = vmatpush.msrb.mxu2 %v2544_v0 }
 0x175   :  { %810 = vmatpush.msra.mxu3 %v2534_v1 }
 0x176   :  { %2408 = vmatmul.msk.f32.vlgmr.msrb.gmra.mxu3 %vm33_vm0, %v3120_v26 }
 0x177   :  { %2752 = vrot.lane.b32.xlu2 %v2989_v58, %s2788_s28  ;;  %v2558_v3 = vpop.permute.xlu1 %2557  ;;  %v2563_v4 = vpop.permute.xlu0 %2562  ;;  %v2415_v58 = vld [vmem:[%s3340_s1 + $0x18] sm:$0xff] }
 0x178   :  { %2412 = vmatmul.msk.f32.vlgmr.msrb.gmra.mxu1 %vm33_vm0, %v3120_v26  ;;  %v2560_v5 = vunpack.i.h.bf16 %v2558_v3  ;;  %v2588_v6 = vpop.permute.xlu2 %2587  ;;  %2413 = vmatmul.msk.f32.vlgmr.msrb.gmra.mxu2 %vm33_vm0, %v3120_v26  ;;  %v2559_v8 = vunpack.i.l.bf16 %v2558_v3  ;;  %v2565_v18 = vunpack.i.h.bf16 %v2563_v4  ;;  %v2564_v19 = vunpack.i.l.bf16 %v2563_v4 }
 0x179   :  { %1060 = vmatpush.msrb.mxu1 %v2570_v2  ;;  %v2590_v9 = vunpack.i.h.bf16 %v2588_v6  ;;  %v2589_v15 = vunpack.i.l.bf16 %v2588_v6 }
 0x17a   :  { %990 = vmatpush.msra.mxu2 %v2560_v5 }
 0x17b   :  { %1061 = vmatpush.msrb.mxu1 %v2569_v7 }
 0x17c   :  { %991 = vmatpush.msra.mxu2 %v2559_v8 }
 0x17e   :  { %2411 = vmatmul.msk.f32.vlgmr.msra.gmra.mxu3 %vm33_vm0, %v3120_v26 }
 0x17f   :  { %v2573_v10 = vpop.permute.xlu1 %2572  ;;  %v2578_v11 = vpop.permute.xlu0 %2577 }
 0x180   :  { %2416 = vmatmul.msk.f32.vlgmr.msra.gmra.mxu1 %vm33_vm0, %v2415_v58  ;;  %v2575_v12 = vunpack.i.h.bf16 %v2573_v10  ;;  %v2580_v13 = vunpack.i.h.bf16 %v2578_v11  ;;  %v2598_v14 = vpop.permute.xlu2 %2597  ;;  %2417 = vmatmul.msk.f32.vlgmr.msra.gmra.mxu2 %vm33_vm0, %v2415_v58  ;;  %v2574_v16 = vunpack.i.l.bf16 %v2573_v10  ;;  %v2579_v17 = vunpack.i.l.bf16 %v2578_v11 }
 0x181   :  { %1165 = vmatpush.msra.mxu1 %v2590_v9  ;;  %v2600_v28 = vunpack.i.h.bf16 %v2598_v14  ;;  %v2599_v35 = vunpack.i.l.bf16 %v2598_v14 }
 0x182   :  { %914 = vmatpush.msrb.mxu3 %v2580_v13  ;;  %1095 = vmatpush.msrb.mxu2 %v2575_v12 }
 0x183   :  { %1166 = vmatpush.msra.mxu1 %v2589_v15 }
 0x184   :  { %915 = vmatpush.msrb.mxu3 %v2579_v17  ;;  %1096 = vmatpush.msrb.mxu2 %v2574_v16 }
 0x186   :  { %1025 = vmatpush.msra.mxu3 %v2565_v18 }
 0x187   :  { %2414 = vmatmul.msk.f32.vlgmr.msrb.gmra.mxu3 %vm33_vm0, %v3120_v26  ;;  %v2608_v20 = vpop.permute.xlu1 %2607  ;;  %v2583_v21 = vpop.permute.xlu0 %2582 }
 0x188   :  { %1026 = vmatpush.msra.mxu3 %v2564_v19  ;;  %v2610_v22 = vunpack.i.h.bf16 %v2608_v20  ;;  %v2585_v23 = vunpack.i.h.bf16 %v2583_v21  ;;  %v2618_v24 = vpop.permute.xlu2 %2617  ;;  %2419 = vmatmul.msk.f32.vlgmr.msrb.gmra.mxu1 %vm33_vm0, %v2415_v58  ;;  %v2609_v25 = vunpack.i.l.bf16 %v2608_v20  ;;  %v2584_v27 = vunpack.i.l.bf16 %v2583_v21 }
 0x189   :  { %2420 = vmatmul.msk.f32.vlgmr.msrb.gmra.mxu2 %vm33_vm0, %v2415_v58  ;;  %v2619_v26 = vunpack.i.l.bf16 %v2618_v24  ;;  %v2620_v47 = vunpack.i.h.bf16 %v2618_v24 }
 0x18a   :  { %1130 = vmatpush.msrb.mxu3 %v2585_v23  ;;  %1200 = vmatpush.msra.mxu2 %v2610_v22  ;;  %v2442_v23 = vld [vmem:[%s3340_s1 + $0x30] sm:$0xff] }
 0x18c   :  { %1131 = vmatpush.msrb.mxu3 %v2584_v27  ;;  %1201 = vmatpush.msra.mxu2 %v2609_v25 }
 0x18e   :  { %1311 = vmatpush.msrb.mxu2 %v2600_v28 }
 0x18f   :  { %2418 = vmatmul.msk.f32.vlgmr.msra.gmra.mxu3 %vm33_vm0, %v2415_v58  ;;  %v2613_v29 = vpop.permute.xlu1 %2612  ;;  %v2593_v31 = vpop.permute.xlu0 %2592 }
 0x190   :  { %v2615_v32 = vunpack.i.h.bf16 %v2613_v29  ;;  %v2595_v33 = vunpack.i.h.bf16 %v2593_v31  ;;  %v2633_v34 = vpop.permute.xlu2 %2632  ;;  %2422 = vmatmul.msk.f32.vlgmr.msra.gmra.mxu1 %vm33_vm0, %v2415_v58  ;;  %v2594_v36 = vunpack.i.l.bf16 %v2593_v31  ;;  %v2614_v45 = vunpack.i.l.bf16 %v2613_v29 }
 0x191   :  { %2423 = vmatmul.msk.f32.vlgmr.msra.gmra.mxu2 %vm33_vm0, %v2415_v58  ;;  %v2634_v53 = vunpack.i.l.bf16 %v2633_v34  ;;  %v2635_v30 = vunpack.i.h.bf16 %v2633_v34 }
 0x192   :  { %1240 = vmatpush.msra.mxu3 %v2595_v33  ;;  %1276 = vmatpush.msrb.mxu1 %v2615_v32 }
 0x194   :  { %1241 = vmatpush.msra.mxu3 %v2594_v36  ;;  %1277 = vmatpush.msrb.mxu1 %v2599_v35  ;;  %v187_v35 = vpop.f32.mrf.mxu1  ;;  %v211_v36 = vpop.f32.mrf.mxu2 }
 0x195   :  { %191 = vst.msk [vmem:[#allocation3] sm:$0xff] %vm190_vm2, %v187_v35 }
 0x196   :  { %214 = vst.msk [vmem:[#allocation3 + $0x8] sm:$0xff] %vm190_vm2, %v211_v36 }
 0x197   :  { %2421 = vmatmul.msk.f32.vlgmr.msrb.gmra.mxu3 %vm33_vm0, %v2415_v58  ;;  %v2628_v38 = vpop.permute.xlu1 %2627  ;;  %v2603_v39 = vpop.permute.xlu0 %2602 }
 0x198   :  { %v2629_v40 = vunpack.i.l.bf16 %v2628_v38  ;;  %v2605_v42 = vunpack.i.h.bf16 %v2603_v39  ;;  %v2604_v43 = vunpack.i.l.bf16 %v2603_v39  ;;  %v2643_v44 = vpop.permute.xlu2 %2642  ;;  %2426 = vmatmul.msk.f32.vlgmr.msrb.gmra.mxu1 %vm33_vm0, %v2424_v37  ;;  %v2630_v46 = vunpack.i.h.bf16 %v2628_v38 }
 0x199   :  { %v2644_v60 = vunpack.i.l.bf16 %v2643_v44  ;;  %v2645_v0 = vunpack.i.h.bf16 %v2643_v44 }
 0x19a   :  { %1312 = vmatpush.msrb.mxu2 %v2605_v42  ;;  %1346 = vmatpush.msrb.mxu3 %v2604_v43 }
 0x19b   :  { %1381 = vmatpush.msra.mxu1 %v2629_v40  ;;  %2427 = vmatmul.msk.f32.vlgmr.msrb.gmra.mxu2 %vm33_vm0, %v2424_v37 }
 0x19c   :  { %1416 = vmatpush.msra.mxu2 %v2619_v26  ;;  %1347 = vmatpush.msrb.mxu3 %v2614_v45 }
 0x19d   :  { %1382 = vmatpush.msra.mxu1 %v2630_v46 }
 0x19f   :  { %2425 = vmatmul.msk.f32.vlgmr.msra.gmra.mxu3 %vm33_vm0, %v2424_v37  ;;  %v2653_v48 = vpop.permute.xlu1 %2652  ;;  %v2623_v49 = vpop.permute.xlu0 %2622 }
 0x1a0   :  { %1451 = vmatpush.msra.mxu3 %v2620_v47  ;;  %v2625_v50 = vunpack.i.h.bf16 %v2623_v49  ;;  %v2624_v51 = vunpack.i.l.bf16 %v2623_v49  ;;  %v3170_v52 = vpop.permute.xlu2 %2672  ;;  %2429 = vmatmul.msk.f32.vlgmr.msra.gmra.mxu1 %vm33_vm0, %v2424_v37  ;;  %v2654_v63 = vunpack.i.l.bf16 %v2653_v48  ;;  %v2655_v1 = vunpack.i.h.bf16 %v2653_v48 }
 0x1a1   :  { %v2674_v17 = vunpack.i.l.bf16 %v3170_v52  ;;  %v2675_v20 = vunpack.i.h.bf16 %v3170_v52 }
 0x1a2   :  { %1417 = vmatpush.msra.mxu2 %v2624_v51  ;;  %1452 = vmatpush.msra.mxu3 %v2625_v50  ;;  %v257_v50 = vpop.f32.mrf.mxu1  ;;  %v280_v51 = vpop.f32.mrf.mxu2 }
 0x1a3   :  { %2430 = vmatmul.msk.f32.vlgmr.msra.gmra.mxu2 %vm33_vm0, %v2424_v37  ;;  %260 = vst.msk [vmem:[#allocation3 + $0x18] sm:$0xff] %vm190_vm2, %v257_v50 }
 0x1a4   :  { %1526 = vmatpush.msrb.mxu2 %v2634_v53  ;;  %283 = vst.msk [vmem:[#allocation3 + $0x20] sm:$0xff] %vm190_vm2, %v280_v51 }
 0x1a7   :  { %2428 = vmatmul.msk.f32.vlgmr.msrb.gmra.mxu3 %vm33_vm0, %v2424_v37  ;;  %v2663_v54 = vpop.permute.xlu1 %2662  ;;  %v2638_v41 = vpop.permute.xlu0 %2637 }
 0x1a8   :  { %1562 = vmatpush.msrb.mxu3 %v2635_v30  ;;  %v2664_v55 = vunpack.i.l.bf16 %v2663_v54  ;;  %v2640_v56 = vunpack.i.h.bf16 %v2638_v41  ;;  %v2639_v57 = vunpack.i.l.bf16 %v2638_v41  ;;  %v2688_v59 = vpop.permute.xlu2 %2687  ;;  %v2665_v62 = vunpack.i.h.bf16 %v2663_v54  ;;  %v2451_v30 = vld [vmem:[%s3340_s1 + $0x38] sm:$0xff]  ;;  %s2789_s1 = smov 8  }
 0x1a9   :  { %v2689_v8 = vunpack.i.l.bf16 %v2688_v59  ;;  %v2690_v9 = vunpack.i.h.bf16 %v2688_v59 }
 0x1aa   :  { %1486 = vmatpush.msrb.mxu1 %v2664_v55  ;;  %1527 = vmatpush.msrb.mxu2 %v2639_v57  ;;  %v326_v41 = vpop.f32.mrf.mxu1  ;;  %v349_v59 = vpop.f32.mrf.mxu2 }
 0x1ab   :  { %1563 = vmatpush.msrb.mxu3 %v2640_v56  ;;  %2434 = vmatmul.msk.f32.vlgmr.msrb.gmra.mxu2 %vm33_vm0, %v3178_v61  ;;  %329 = vst.msk [vmem:[#allocation3 + $0x30] sm:$0xff] %vm190_vm2, %v326_v41 }
 0x1ac   :  { %1632 = vmatpush.msra.mxu2 %v2644_v60  ;;  %1487 = vmatpush.msrb.mxu1 %v2665_v62  ;;  %352 = vst.msk [vmem:[#allocation3 + $0x38] sm:$0xff] %vm190_vm2, %v349_v59 }
 0x1ad   :  { %2432 = vmatmul.msk.f32.vlgmr.msrb.gmra.mxu1 %vm33_vm0, %v2424_v37 }
 0x1ae   :  { %1597 = vmatpush.msra.mxu1 %v2654_v63 }
 0x1af   :  { %2431 = vmatmul.msk.f32.vlgmr.msra.gmra.mxu3 %vm33_vm0, %v2424_v37  ;;  %v2668_v2 = vpop.permute.xlu1 %2667  ;;  %v2648_v3 = vpop.permute.xlu0 %2647 }
 0x1b0   :  { %1667 = vmatpush.msra.mxu3 %v2645_v0  ;;  %v2669_v4 = vunpack.i.l.bf16 %v2668_v2  ;;  %v2650_v5 = vunpack.i.h.bf16 %v2648_v3  ;;  %v2649_v6 = vunpack.i.l.bf16 %v2648_v3  ;;  %v2693_v7 = vpop.permute.xlu2 %2692  ;;  %1598 = vmatpush.msra.mxu1 %v2655_v1  ;;  %v2670_v58 = vunpack.i.h.bf16 %v2668_v2  ;;  %v234_v37 = vpop.f32.mrf.mxu3 }
 0x1b1   :  { %v2695_v18 = vunpack.i.h.bf16 %v2693_v7  ;;  %v2694_v19 = vunpack.i.l.bf16 %v2693_v7  ;;  %237 = vst.msk [vmem:[#allocation3 + $0x10] sm:$0xff] %vm190_vm2, %v234_v37 }
 0x1b2   :  { %1633 = vmatpush.msra.mxu2 %v2649_v6  ;;  %1668 = vmatpush.msra.mxu3 %v2650_v5  ;;  %v421_v5 = vpop.f32.mrf.mxu1 }
 0x1b3   :  { %1702 = vmatpush.msrb.mxu1 %v2669_v4  ;;  %2437 = vmatmul.msk.f32.vlgmr.msra.gmra.mxu2 %vm33_vm0, %v3178_v61 }
 0x1b4   :  { %1737 = vmatpush.msrb.mxu2 %v2689_v8  ;;  %425 = vrot.lane.b32.xlu1 %v421_v5, %s2789_s1  ;;  %v456_v8 = vpop.f32.mrf.mxu2 }
 0x1b5   :  { %1703 = vmatpush.msrb.mxu1 %v2670_v58  ;;  %460 = vrot.lane.b32.xlu2 %v456_v8, %s2789_s1 }
 0x1b6   :  { %2436 = vmatmul.msk.f32.vlgmr.msra.gmra.mxu1 %vm33_vm0, %v3178_v61 }
 0x1b7   :  { %2435 = vmatmul.msk.f32.vlgmr.msrb.gmra.mxu3 %vm33_vm0, %v3178_v61  ;;  %v2683_v10 = vpop.permute.xlu1 %2682  ;;  %v2658_v11 = vpop.permute.xlu0 %2657 }
 0x1b8   :  { %1772 = vmatpush.msrb.mxu3 %v2690_v9  ;;  %v2685_v12 = vunpack.i.h.bf16 %v2683_v10  ;;  %v2660_v13 = vunpack.i.h.bf16 %v2658_v11  ;;  %v2659_v14 = vunpack.i.l.bf16 %v2658_v11  ;;  %v2703_v15 = vpop.permute.xlu2 %2702  ;;  %v2684_v16 = vunpack.i.l.bf16 %v2683_v10  ;;  %v303_v52 = vpop.f32.mrf.mxu3 }
 0x1b9   :  { %v2704_v21 = vunpack.i.l.bf16 %v2703_v15  ;;  %v2705_v22 = vunpack.i.h.bf16 %v2703_v15  ;;  %306 = vst.msk [vmem:[#allocation3 + $0x28] sm:$0xff] %vm190_vm2, %v303_v52 }
 0x1ba   :  { %1738 = vmatpush.msrb.mxu2 %v2659_v14  ;;  %1773 = vmatpush.msrb.mxu3 %v2660_v13  ;;  %v526_v13 = vpop.f32.mrf.mxu1 }
 0x1bb   :  { %1812 = vmatpush.msrb.mxu0 %v2684_v16  ;;  %1848 = vmatpush.msra.mxu1 %v2685_v12 }
 0x1bc   :  { %1883 = vmatpush.msra.mxu2 %v2674_v17 }
 0x1bd   :  { %1813 = vmatpush.msrb.mxu0 %v2694_v19  ;;  %1849 = vmatpush.msra.mxu1 %v2695_v18 }
 0x1be   :  { %2439 = vmatmul.msk.f32.vlgmr.msrb.gmra.mxu1 %vm33_vm0, %v3178_v61  ;;  %2440 = vmatmul.msk.f32.vlgmr.msrb.gmra.mxu2 %vm33_vm0, %v3178_v61 }
 0x1bf   :  { %2438 = vmatmul.msk.f32.vlgmr.msra.gmra.mxu3 %vm33_vm0, %v3178_v61  ;;  %1953 = vmatpush.msra.mxu0 %v2704_v21  ;;  %v2698_v24 = vpop.permute.xlu1 %2697  ;;  %v2678_v25 = vpop.permute.xlu0 %2677 }
 0x1c0   :  { %1918 = vmatpush.msra.mxu3 %v2675_v20  ;;  %1988 = vmatpush.msrb.mxu1 %v2705_v22  ;;  %v2680_v27 = vunpack.i.h.bf16 %v2678_v25  ;;  %v2679_v28 = vunpack.i.l.bf16 %v2678_v25  ;;  %v2723_v29 = vpop.permute.xlu2 %2722  ;;  %v2700_v38 = vunpack.i.h.bf16 %v2698_v24  ;;  %v2699_v39 = vunpack.i.l.bf16 %v2698_v24  ;;  %v385_v1 = vpop.f32.mrf.mxu3 }
 0x1c1   :  { %2443 = vmatmul.msk.f32.vlgmr.msrb.gmra.mxu0 %vm33_vm0, %v2442_v23  ;;  %v2724_v43 = vunpack.i.l.bf16 %v2723_v29  ;;  %v2725_v26 = vunpack.i.h.bf16 %v2723_v29 }
 0x1c2   :  { %1884 = vmatpush.msra.mxu2 %v2679_v28  ;;  %1919 = vmatpush.msra.mxu3 %v2680_v27 }
 0x1c6   :  { %2444 = vmatmul.msk.f32.vlgmr.msra.gmra.mxu1 %vm33_vm0, %v2442_v23  ;;  %2445 = vmatmul.msk.f32.vlgmr.msra.gmra.mxu2 %vm33_vm0, %v2442_v23 }
 0x1c7   :  { %2441 = vmatmul.msk.f32.vlgmr.msrb.gmra.mxu3 %vm33_vm0, %v3178_v61  ;;  %v2718_v31 = vpop.permute.xlu1 %2717  ;;  %v2708_v32 = vpop.permute.xlu0 %2707 }
 0x1c8   :  { %v2710_v33 = vunpack.i.h.bf16 %v2708_v32  ;;  %v2709_v34 = vunpack.i.l.bf16 %v2708_v32  ;;  %v2719_v40 = vunpack.i.l.bf16 %v2718_v31  ;;  %v2720_v44 = vunpack.i.h.bf16 %v2718_v31  ;;  %v491_v58 = vpop.f32.mrf.mxu3 }
 0x1c9   :  { %v2748_v42 = vpop.permute.xlu2 %2747  ;;  %495 = vrot.lane.b32.xlu1 %v491_v58, %s2789_s1 }
 0x1ca   :  { %2023 = vmatpush.msrb.mxu2 %v2709_v34  ;;  %2058 = vmatpush.msrb.mxu3 %v2710_v33  ;;  %v2749_v45 = vunpack.i.l.bf16 %v2748_v42  ;;  %v2750_v53 = vunpack.i.h.bf16 %v2748_v42 }
 0x1cc   :  { %2024 = vmatpush.msrb.mxu2 %v2699_v39  ;;  %2059 = vmatpush.msrb.mxu3 %v2700_v38 }
 0x1ce   :  { %2169 = vmatpush.msra.mxu2 %v2719_v40 }
 0x1cf   :  { %2446 = vmatmul.msk.f32.vlgmr.msra.gmra.mxu3 %vm33_vm0, %v2442_v23  ;;  %v2733_v46 = vpop.permute.xlu1 %2732  ;;  %v2713_v47 = vpop.permute.xlu0 %2712  ;;  %2449 = vmatmul.msk.f32.vlgmr.msrb.gmra.mxu2 %vm33_vm0, %v2442_v23 }
 0x1d0   :  { %2204 = vmatpush.msra.mxu3 %v2720_v44  ;;  %2170 = vmatpush.msra.mxu2 %v2724_v43  ;;  %v2715_v48 = vunpack.i.h.bf16 %v2713_v47  ;;  %v2714_v49 = vunpack.i.l.bf16 %v2713_v47  ;;  %v2735_v60 = vunpack.i.h.bf16 %v2733_v46  ;;  %v2734_v61 = vunpack.i.l.bf16 %v2733_v46 }
 0x1d1   :  { %v2753_v62 = vpop.permute.xlu2 %2752 }
 0x1d2   :  { %2205 = vmatpush.msra.mxu3 %v2725_v26  ;;  %2309 = vmatpush.msrb.mxu2 %v2749_v45  ;;  %v2755_v2 = vunpack.i.h.bf16 %v2753_v62  ;;  %v2754_v3 = vunpack.i.l.bf16 %v2753_v62 }
 0x1d3   :  { %1954 = vmatpush.msra.mxu0 %v2714_v49  ;;  %1989 = vmatpush.msrb.mxu1 %v2715_v48 }
 0x1d4   :  { %2447 = vmatmul.msk.f32.vlgmr.msra.gmra.mxu0 %vm33_vm0, %v2442_v23  ;;  %2448 = vmatmul.msk.f32.vlgmr.msrb.gmra.mxu1 %vm33_vm0, %v2442_v23 }
 0x1d7   :  { %2450 = vmatmul.msk.f32.vlgmr.msrb.gmra.mxu3 %vm33_vm0, %v2442_v23  ;;  %2454 = vmatmul.msk.f32.vlgmr.msra.gmra.mxu2 %vm33_vm0, %v2451_v30  ;;  %v2743_v55 = vpop.permute.xlu1 %2742 }
 0x1d8   :  { %2344 = vmatpush.msrb.mxu3 %v2750_v53  ;;  %v2728_v54 = vpop.permute.xlu0 %2727  ;;  %v2745_v63 = vunpack.i.h.bf16 %v2743_v55  ;;  %v2744_v0 = vunpack.i.l.bf16 %v2743_v55 }
 0x1d9   :  { %v2730_v56 = vunpack.i.h.bf16 %v2728_v54  ;;  %v2729_v57 = vunpack.i.l.bf16 %v2728_v54 }
 0x1db   :  { %2098 = vmatpush.msrb.mxu0 %v2729_v57  ;;  %2134 = vmatpush.msra.mxu1 %v2730_v56 }
 0x1dd   :  { %2099 = vmatpush.msrb.mxu0 %v2734_v61  ;;  %2135 = vmatpush.msra.mxu1 %v2735_v60 }
 0x1de   :  { %2452 = vmatmul.msk.f32.vlgmr.msrb.gmra.mxu0 %vm33_vm0, %v2451_v30  ;;  %2453 = vmatmul.msk.f32.vlgmr.msra.gmra.mxu1 %vm33_vm0, %v2451_v30 }
 0x1df   :  { %2239 = vmatpush.msra.mxu0 %v2744_v0  ;;  %2274 = vmatpush.msrb.mxu1 %v2745_v63 }
 0x1e0   :  { %2455 = vmatmul.msk.f32.vlgmr.msra.gmra.mxu3 %vm33_vm0, %v2451_v30  ;;  %v2738_v4 = vpop.permute.xlu0 %2737 }
 0x1e1   :  { %2240 = vmatpush.msra.mxu0 %v2754_v3  ;;  %2275 = vmatpush.msrb.mxu1 %v2755_v2  ;;  %v2740_v6 = vunpack.i.h.bf16 %v2738_v4  ;;  %v2739_v7 = vunpack.i.l.bf16 %v2738_v4  ;;  %v561_v9 = vpop.f32.mrf.mxu2 }
 0x1e3   :  { %2310 = vmatpush.msrb.mxu2 %v2739_v7  ;;  %2345 = vmatpush.msrb.mxu3 %v2740_v6 }
 0x1e4   :  { %2458 = vmatmul.msk.f32.vlgmr.msrb.gmra.mxu2 %vm33_vm0, %v2451_v30  ;;  %v631_v16 = vpop.f32.mrf.mxu1 }
 0x1e6   :  { %2456 = vmatmul.msk.f32.vlgmr.msra.gmra.mxu0 %vm33_vm0, %v2451_v30  ;;  %2457 = vmatmul.msk.f32.vlgmr.msrb.gmra.mxu1 %vm33_vm0, %v2451_v30 }
 0x1e8   :  { %2459 = vmatmul.msk.f32.vlgmr.msrb.gmra.mxu3 %vm33_vm0, %v2451_v30 }
 0x1ea   :  { %v671_v10 = vpop.f32.mrf.mxu2 }
 0x1ed   :  { %v742_v20 = vpop.f32.mrf.mxu1 }
 0x1f0   :  { %v596_v14 = vpop.f32.mrf.mxu3 }
 0x1f3   :  { %v777_v12 = vpop.f32.mrf.mxu2 }
 0x1f5   :  { %v847_v24 = vpop.f32.mrf.mxu1 }
 0x1f9   :  { %v707_v18 = vpop.f32.mrf.mxu3 }
 0x1fb   :  { %v882_v15 = vpop.f32.mrf.mxu2 }
 0x1fd   :  { %v957_v29 = vpop.f32.mrf.mxu1 }
 0x201   :  { %v812_v21 = vpop.f32.mrf.mxu3 }
 0x203   :  { %v993_v19 = vpop.f32.mrf.mxu2 }
 0x205   :  { %v1063_v31 = vpop.f32.mrf.mxu1 }
 0x20a   :  { %v917_v27 = vpop.f32.mrf.mxu3 }
 0x20c   :  { %v1098_v23 = vpop.f32.mrf.mxu2 }
 0x20d   :  { %v1168_v34 = vpop.f32.mrf.mxu1 }
 0x20f   :  { %v461_v43 = vpop.permute.xlu2 %460 }
 0x210   :  { %463 = vst.msk [vmem:[#allocation3 + $0x10] sm:$0xff] %vm392_vm3, %v461_v43 }
 0x212   :  { %v1028_v32 = vpop.f32.mrf.mxu3 }
 0x214   :  { %v1203_v28 = vpop.f32.mrf.mxu2 }
 0x215   :  { %v1279_v37 = vpop.f32.mrf.mxu1 }
 0x21a   :  { %v1133_v35 = vpop.f32.mrf.mxu3 }
 0x21d   :  { %v1384_v42 = vpop.f32.mrf.mxu1 }
 0x21e   :  { %v1314_v33 = vpop.f32.mrf.mxu2 }
 0x222   :  { %v1243_v38 = vpop.f32.mrf.mxu3 }
 0x226   :  { %v1419_v36 = vpop.f32.mrf.mxu2  ;;  %v426_v40 = vpop.permute.xlu1 %425 }
 0x227   :  { %428 = vst.msk [vmem:[#allocation3 + $0x8] sm:$0xff] %vm392_vm3, %v426_v40 }
 0x22a   :  { %v1349_v44 = vpop.f32.mrf.mxu3  ;;  %v1489_v46 = vpop.f32.mrf.mxu1 }
 0x22e   :  { %v1529_v39 = vpop.f32.mrf.mxu2 }
 0x232   :  { %v1454_v47 = vpop.f32.mrf.mxu3 }
 0x233   :  { %v1600_v49 = vpop.f32.mrf.mxu1 }
 0x236   :  { %v1635_v45 = vpop.f32.mrf.mxu2 }
 0x23a   :  { %v1565_v50 = vpop.f32.mrf.mxu3 }
 0x23b   :  { %v496_v26 = vpop.permute.xlu1 %495  ;;  %v1705_v52 = vpop.f32.mrf.mxu1 }
 0x23c   :  { %498 = vst.msk [vmem:[#allocation3 + $0x18] sm:$0xff] %vm392_vm3, %v496_v26 }
 0x23e   :  { %v1815_v11 = vpop.f32.mrf.mxu0 }
 0x23f   :  { %1819 = vrot.lane.b32.xlu0 %v1815_v11, %s2790_s14 }
 0x241   :  { %v1740_v48 = vpop.f32.mrf.mxu2 }
 0x242   :  { %v1670_v53 = vpop.f32.mrf.mxu3 }
 0x243   :  { %v1851_v54 = vpop.f32.mrf.mxu1 }
 0x247   :  { %389 = vrot.lane.b32.xlu0 %v385_v1, %s2789_s1 }
 0x249   :  { %v1886_v51 = vpop.f32.mrf.mxu2 }
 0x24a   :  { %v1775_v55 = vpop.f32.mrf.mxu3 }
 0x24f   :  { %530 = vrot.lane.b32.xlu0 %v526_v13, %s2789_s1 }
 0x251   :  { %v1956_v17 = vpop.f32.mrf.mxu0  ;;  %v1991_v60 = vpop.f32.mrf.mxu1 }
 0x252   :  { %1960 = vrot.lane.b32.xlu1 %v1956_v17, %s2790_s14  ;;  %v2026_v30 = vpop.f32.mrf.mxu2  ;;  %v1921_v61 = vpop.f32.mrf.mxu3 }
 0x25a   :  { %600 = vrot.lane.b32.xlu1 %v596_v14, %s2789_s1  ;;  %v2172_v56 = vpop.f32.mrf.mxu2  ;;  %v2061_v2 = vpop.f32.mrf.mxu3 }
 0x25b   :  { %v2101_v22 = vpop.f32.mrf.mxu0  ;;  %v2137_v1 = vpop.f32.mrf.mxu1 }
 0x25c   :  { %2105 = vrot.lane.b32.xlu2 %v2101_v22, %s2791_s15 }
 0x262   :  { %711 = vrot.lane.b32.xlu1 %v707_v18, %s2792_s16 }
 0x263   :  { %v2242_v25 = vpop.f32.mrf.mxu0  ;;  %v2277_v5 = vpop.f32.mrf.mxu1 }
 0x264   :  { %2246 = vrot.lane.b32.xlu0 %v2242_v25, %s2791_s15  ;;  %565 = vrot.lane.b32.xlu2 %v561_v9, %s2789_s1  ;;  %v2207_v7 = vpop.f32.mrf.mxu3 }
 0x267   :  { %v2312_v11 = vpop.f32.mrf.mxu2 }
 0x26a   :  { %816 = vrot.lane.b32.xlu1 %v812_v21, %s2792_s16 }
 0x26c   :  { %635 = vrot.lane.b32.xlu0 %v631_v16, %s2789_s1  ;;  %675 = vrot.lane.b32.xlu2 %v671_v10, %s2792_s16  ;;  %v2347_v10 = vpop.f32.mrf.mxu3 }
 0x272   :  { %921 = vrot.lane.b32.xlu1 %v917_v27, %s2792_s16 }
 0x274   :  { %746 = vrot.lane.b32.xlu0 %v742_v20, %s2792_s16  ;;  %781 = vrot.lane.b32.xlu2 %v777_v12, %s2792_s16 }
 0x27a   :  { %1032 = vrot.lane.b32.xlu1 %v1028_v32, %s2793_s17 }
 0x27c   :  { %851 = vrot.lane.b32.xlu0 %v847_v24, %s2792_s16  ;;  %886 = vrot.lane.b32.xlu2 %v882_v15, %s2792_s16 }
 0x282   :  { %1137 = vrot.lane.b32.xlu1 %v1133_v35, %s2793_s17 }
 0x284   :  { %961 = vrot.lane.b32.xlu0 %v957_v29, %s2793_s17  ;;  %997 = vrot.lane.b32.xlu2 %v993_v19, %s2793_s17 }
 0x28a   :  { %1318 = vrot.lane.b32.xlu1 %v1314_v33, %s2794_s18 }
 0x28c   :  { %1067 = vrot.lane.b32.xlu0 %v1063_v31, %s2793_s17  ;;  %1102 = vrot.lane.b32.xlu2 %v1098_v23, %s2793_s17 }
 0x292   :  { %1247 = vrot.lane.b32.xlu1 %v1243_v38, %s2794_s18 }
 0x294   :  { %1172 = vrot.lane.b32.xlu0 %v1168_v34, %s2793_s17  ;;  %1207 = vrot.lane.b32.xlu2 %v1203_v28, %s2793_s17 }
 0x29a   :  { %1423 = vrot.lane.b32.xlu1 %v1419_v36, %s2794_s18 }
 0x29c   :  { %1283 = vrot.lane.b32.xlu0 %v1279_v37, %s2794_s18  ;;  %1353 = vrot.lane.b32.xlu2 %v1349_v44, %s2794_s18 }
 0x2a2   :  { %1533 = vrot.lane.b32.xlu1 %v1529_v39, %s2795_s19 }
 0x2a4   :  { %1388 = vrot.lane.b32.xlu0 %v1384_v42, %s2794_s18  ;;  %1458 = vrot.lane.b32.xlu2 %v1454_v47, %s2794_s18 }
 0x2aa   :  { %1639 = vrot.lane.b32.xlu1 %v1635_v45, %s2795_s19 }
 0x2ac   :  { %1569 = vrot.lane.b32.xlu2 %v1565_v50, %s2795_s19  ;;  %1493 = vrot.lane.b32.xlu0 %v1489_v46, %s2794_s18 }
 0x2b1   :  { %v3256_v41 = vpop.permute.xlu0 %1819 }
 0x2b2   :  { %1744 = vrot.lane.b32.xlu1 %v1740_v48, %s2795_s19 }
 0x2b4   :  { %1674 = vrot.lane.b32.xlu2 %v1670_v53, %s2795_s19  ;;  %1604 = vrot.lane.b32.xlu0 %v1600_v49, %s2795_s19 }
 0x2b6   :  { %v3261_v57 = vpop.permute.xlu2 %2105 }
 0x2b9   :  { %v390_v59 = vpop.permute.xlu0 %389 }
 0x2ba   :  { %2176 = vrot.lane.b32.xlu1 %v2172_v56, %s2791_s15  ;;  %393 = vst.msk [vmem:[#allocation3] sm:$0xff] %vm392_vm3, %v390_v59 }
 0x2bc   :  { %2030 = vrot.lane.b32.xlu0 %v2026_v30, %s2790_s14  ;;  %1890 = vrot.lane.b32.xlu2 %v1886_v51, %s2790_s14 }
 0x2be   :  { %v566_v62 = vpop.permute.xlu2 %565 }
 0x2bf   :  { %568 = vst.msk [vmem:[#allocation3 + $0x28] sm:$0xff] %vm392_vm3, %v566_v62 }
 0x2c1   :  { %v531_v63 = vpop.permute.xlu0 %530 }
 0x2c2   :  { %1855 = vrot.lane.b32.xlu1 %v1851_v54, %s2790_s14  ;;  %533 = vst.msk [vmem:[#allocation3 + $0x20] sm:$0xff] %vm392_vm3, %v531_v63 }
 0x2c4   :  { %v3270_v0 = vpop.permute.xlu1 %1960  ;;  %1709 = vrot.lane.b32.xlu0 %v1705_v52, %s2795_s19  ;;  %1779 = vrot.lane.b32.xlu2 %v1775_v55, %s2795_s19 }
 0x2c6   :  { %v676_v3 = vpop.permute.xlu2 %675 }
 0x2c7   :  { %679 = vst.msk [vmem:[#allocation3] sm:$0xff] %vm678_vm4, %v676_v3 }
 0x2ca   :  { %2065 = vrot.lane.b32.xlu1 %v2061_v2, %s2790_s14 }
 0x2cc   :  { %v601_v4 = vpop.permute.xlu1 %600  ;;  %1925 = vrot.lane.b32.xlu0 %v1921_v61, %s2790_s14  ;;  %1995 = vrot.lane.b32.xlu2 %v1991_v60, %s2790_s14 }
 0x2cd   :  { %603 = vst.msk [vmem:[#allocation3 + $0x30] sm:$0xff] %vm392_vm3, %v601_v4 }
 0x2ce   :  { %v782_v6 = vpop.permute.xlu2 %781 }
 0x2cf   :  { %784 = vst.msk [vmem:[#allocation3 + $0x18] sm:$0xff] %vm678_vm4, %v782_v6 }
 0x2d2   :  { %2281 = vrot.lane.b32.xlu1 %v2277_v5, %s2791_s15 }
 0x2d4   :  { %v712_v8 = vpop.permute.xlu1 %711  ;;  %2211 = vrot.lane.b32.xlu2 %v2207_v7, %s2791_s15  ;;  %2141 = vrot.lane.b32.xlu0 %v2137_v1, %s2791_s15 }
 0x2d5   :  { %714 = vst.msk [vmem:[#allocation3 + $0x8] sm:$0xff] %vm678_vm4, %v712_v8 }
 0x2d6   :  { %v2247_v58 = vpop.permute.xlu0 %2246  ;;  %v887_v9 = vpop.permute.xlu2 %886 }
 0x2d7   :  { %889 = vst.msk [vmem:[#allocation3 + $0x30] sm:$0xff] %vm678_vm4, %v887_v9 }
 0x2dc   :  { %v817_v12 = vpop.permute.xlu1 %816  ;;  %2351 = vrot.lane.b32.xlu0 %v2347_v10, %s2791_s15  ;;  %2316 = vrot.lane.b32.xlu2 %v2312_v11, %s2791_s15 }
 0x2dd   :  { %819 = vst.msk [vmem:[#allocation3 + $0x20] sm:$0xff] %vm678_vm4, %v817_v12 }
 0x2de   :  { %v636_v13 = vpop.permute.xlu0 %635  ;;  %v998_v14 = vpop.permute.xlu2 %997 }
 0x2df   :  { %638 = vst.msk [vmem:[#allocation3 + $0x38] sm:$0xff] %vm392_vm3, %v636_v13 }
 0x2e0   :  { %1000 = vst.msk [vmem:[#allocation3 + $0x8] sm:$0xff] %vm964_vm5, %v998_v14 }
 0x2e4   :  { %v922_v15 = vpop.permute.xlu1 %921 }
 0x2e5   :  { %924 = vst.msk [vmem:[#allocation3 + $0x38] sm:$0xff] %vm678_vm4, %v922_v15 }
 0x2e6   :  { %v747_v16 = vpop.permute.xlu0 %746  ;;  %v1103_v17 = vpop.permute.xlu2 %1102 }
 0x2e7   :  { %749 = vst.msk [vmem:[#allocation3 + $0x10] sm:$0xff] %vm678_vm4, %v747_v16 }
 0x2e8   :  { %1105 = vst.msk [vmem:[#allocation3 + $0x20] sm:$0xff] %vm964_vm5, %v1103_v17 }
 0x2ec   :  { %v1033_v18 = vpop.permute.xlu1 %1032 }
 0x2ed   :  { %1035 = vst.msk [vmem:[#allocation3 + $0x10] sm:$0xff] %vm964_vm5, %v1033_v18 }
 0x2ee   :  { %v852_v19 = vpop.permute.xlu0 %851  ;;  %v1208_v20 = vpop.permute.xlu2 %1207 }
 0x2ef   :  { %854 = vst.msk [vmem:[#allocation3 + $0x28] sm:$0xff] %vm678_vm4, %v852_v19 }
 0x2f0   :  { %1210 = vst.msk [vmem:[#allocation3 + $0x38] sm:$0xff] %vm964_vm5, %v1208_v20 }
 0x2f4   :  { %v1138_v21 = vpop.permute.xlu1 %1137 }
 0x2f5   :  { %1140 = vst.msk [vmem:[#allocation3 + $0x28] sm:$0xff] %vm964_vm5, %v1138_v21 }
 0x2f6   :  { %v962_v22 = vpop.permute.xlu0 %961  ;;  %v1354_v23 = vpop.permute.xlu2 %1353 }
 0x2f7   :  { %965 = vst.msk [vmem:[#allocation3] sm:$0xff] %vm964_vm5, %v962_v22 }
 0x2fc   :  { %v1319_v24 = vpop.permute.xlu1 %1318 }
 0x2fd   :  { %1321 = vst.msk [vmem:[#allocation3 + $0x10] sm:$0xff] %vm1250_vm6, %v1319_v24 }
 0x2fe   :  { %v1068_v25 = vpop.permute.xlu0 %1067  ;;  %v1459_v27 = vpop.permute.xlu2 %1458 }
 0x2ff   :  { %1070 = vst.msk [vmem:[#allocation3 + $0x18] sm:$0xff] %vm964_vm5, %v1068_v25 }
 0x300   :  { %1356 = vst.msk [vmem:[#allocation3 + $0x18] sm:$0xff] %vm1250_vm6, %v1354_v23 }
 0x304   :  { %v1248_v28 = vpop.permute.xlu1 %1247 }
 0x305   :  { %1251 = vst.msk [vmem:[#allocation3] sm:$0xff] %vm1250_vm6, %v1248_v28 }
 0x306   :  { %v1173_v29 = vpop.permute.xlu0 %1172  ;;  %v1570_v31 = vpop.permute.xlu2 %1569 }
 0x307   :  { %1175 = vst.msk [vmem:[#allocation3 + $0x30] sm:$0xff] %vm964_vm5, %v1173_v29 }
 0x308   :  { %1461 = vst.msk [vmem:[#allocation3 + $0x30] sm:$0xff] %vm1250_vm6, %v1459_v27 }
 0x30c   :  { %v1424_v32 = vpop.permute.xlu1 %1423 }
 0x30d   :  { %1426 = vst.msk [vmem:[#allocation3 + $0x28] sm:$0xff] %vm1250_vm6, %v1424_v32 }
 0x30e   :  { %v1284_v33 = vpop.permute.xlu0 %1283  ;;  %v1675_v34 = vpop.permute.xlu2 %1674 }
 0x30f   :  { %1286 = vst.msk [vmem:[#allocation3 + $0x8] sm:$0xff] %vm1250_vm6, %v1284_v33 }
 0x310   :  { %1572 = vst.msk [vmem:[#allocation3 + $0x8] sm:$0xff] %vm1536_vm7, %v1570_v31 }
 0x314   :  { %v1534_v35 = vpop.permute.xlu1 %1533 }
 0x315   :  { %1537 = vst.msk [vmem:[#allocation3] sm:$0xff] %vm1536_vm7, %v1534_v35 }
 0x316   :  { %1823 = vst.msk [vmem:[#allocation3] sm:$0xff] %vm1822_vm8, %v3256_v41  ;;  %v1389_v36 = vpop.permute.xlu0 %1388  ;;  %v1891_v37 = vpop.permute.xlu2 %1890 }
 0x317   :  { %2109 = vst.msk [vmem:[#allocation3] sm:$0xff] %vm2108_vm9, %v3261_v57 }
 0x318   :  { %1391 = vst.msk [vmem:[#allocation3 + $0x20] sm:$0xff] %vm1250_vm6, %v1389_v36 }
 0x319   :  { %1677 = vst.msk [vmem:[#allocation3 + $0x20] sm:$0xff] %vm1536_vm7, %v1675_v34 }
 0x31a   :  { %1963 = vst.msk [vmem:[#allocation3 + $0x20] sm:$0xff] %vm1822_vm8, %v3270_v0 }
 0x31b   :  { %2249 = vst.msk [vmem:[#allocation3 + $0x20] sm:$0xff] %vm2108_vm9, %v2247_v58 }
 0x31c   :  { %v1640_v38 = vpop.permute.xlu1 %1639 }
 0x31d   :  { %1642 = vst.msk [vmem:[#allocation3 + $0x18] sm:$0xff] %vm1536_vm7, %v1640_v38 }
 0x31e   :  { %v1494_v39 = vpop.permute.xlu0 %1493  ;;  %v1780_v40 = vpop.permute.xlu2 %1779 }
 0x31f   :  { %1496 = vst.msk [vmem:[#allocation3 + $0x38] sm:$0xff] %vm1250_vm6, %v1494_v39 }
 0x320   :  { %1782 = vst.msk [vmem:[#allocation3 + $0x38] sm:$0xff] %vm1536_vm7, %v1780_v40 }
 0x324   :  { %v1745_v42 = vpop.permute.xlu1 %1744 }
 0x325   :  { %1747 = vst.msk [vmem:[#allocation3 + $0x30] sm:$0xff] %vm1536_vm7, %v1745_v42 }
 0x326   :  { %v1605_v43 = vpop.permute.xlu0 %1604  ;;  %v1996_v44 = vpop.permute.xlu2 %1995 }
 0x327   :  { %1607 = vst.msk [vmem:[#allocation3 + $0x10] sm:$0xff] %vm1536_vm7, %v1605_v43 }
 0x328   :  { %1893 = vst.msk [vmem:[#allocation3 + $0x10] sm:$0xff] %vm1822_vm8, %v1891_v37 }
 0x32c   :  { %v2177_v26 = vpop.permute.xlu1 %2176 }
 0x32d   :  { %2179 = vst.msk [vmem:[#allocation3 + $0x10] sm:$0xff] %vm2108_vm9, %v2177_v26 }
 0x32e   :  { %v2031_v45 = vpop.permute.xlu0 %2030  ;;  %v2212_v46 = vpop.permute.xlu2 %2211 }
 0x32f   :  { %2033 = vst.msk [vmem:[#allocation3 + $0x30] sm:$0xff] %vm1822_vm8, %v2031_v45 }
 0x334   :  { %v1856_v47 = vpop.permute.xlu1 %1855 }
 0x335   :  { %1858 = vst.msk [vmem:[#allocation3 + $0x8] sm:$0xff] %vm1822_vm8, %v1856_v47 }
 0x336   :  { %v1710_v48 = vpop.permute.xlu0 %1709  ;;  %v2317_v49 = vpop.permute.xlu2 %2316 }
 0x337   :  { %1712 = vst.msk [vmem:[#allocation3 + $0x28] sm:$0xff] %vm1536_vm7, %v1710_v48 }
 0x338   :  { %1998 = vst.msk [vmem:[#allocation3 + $0x28] sm:$0xff] %vm1822_vm8, %v1996_v44 }
 0x339   :  { %2319 = vst.msk [vmem:[#allocation3 + $0x30] sm:$0xff] %vm2108_vm9, %v2317_v49 }
 0x33c   :  { %v2066_v50 = vpop.permute.xlu1 %2065 }
 0x33d   :  { %2068 = vst.msk [vmem:[#allocation3 + $0x38] sm:$0xff] %vm1822_vm8, %v2066_v50 }
 0x33e   :  { %v1926_v51 = vpop.permute.xlu0 %1925 }
 0x33f   :  { %1928 = vst.msk [vmem:[#allocation3 + $0x18] sm:$0xff] %vm1822_vm8, %v1926_v51 }
 0x340   :  { %2214 = vst.msk [vmem:[#allocation3 + $0x18] sm:$0xff] %vm2108_vm9, %v2212_v46 }
 0x344   :  { %v2282_v52 = vpop.permute.xlu1 %2281 }
 0x345   :  { %2284 = vst.msk [vmem:[#allocation3 + $0x28] sm:$0xff] %vm2108_vm9, %v2282_v52 }
 0x346   :  { %v2142_v53 = vpop.permute.xlu0 %2141 }
 0x347   :  { %2144 = vst.msk [vmem:[#allocation3 + $0x8] sm:$0xff] %vm2108_vm9, %v2142_v53 }
 0x34e   :  { %v2352_v30 = vpop.permute.xlu0 %2351 }
 0x34f   :  { %2354 = vst.msk [vmem:[#allocation3 + $0x38] sm:$0xff] %vm2108_vm9, %v2352_v30 }
 0x350   :  { %2367 = dma.vmem_to_hbm [thread:$0]  %s2360_s22, 1024, %s2362_s21, [#allocation4], %s2797_s23, %s2797_s23, %s2789_s1  }
 0x351   :  { %2780 = dma.done.wait [#allocation4], 1024  }
 0x352   :  { %2781 = vsyncadd [#allocation4], 4294966272 }
 0x353   :  { %2372 = vsyncpa [#allocation4], 1 }

</bundles_post_ra>
